<compile_context>
chip_gen: v7x
topology: tpu7x:2x2x1
jax: 0.10.0
libtpu: 0.0.40
codegen_flags: <defaults>
</compile_context>

<pallas_src>
import math

import jax
import jax.numpy as jnp
from jax import lax
from jax.experimental import pallas as pl
from jax.experimental.pallas import tpu as pltpu

# ---- model hyperparameters (small, consistent with the module) ----
D_MODEL = 32
NUM_HEADS = 4
DIM_FF = 64
NUM_LAYERS = 2
SEQ = 8
BATCH = 2
LN_EPS = 1e-5
LANES = 128


# --------------------------------------------------------------------------
# Kernel
# --------------------------------------------------------------------------
def _make_encoder_kernel(num_layers, num_heads, batch, seq, d_model, dim_ff,
                         pack):
    """Fused kernel: all layers + whole batch in a single invocation."""
    bs = batch * seq
    hd = d_model // num_heads
    out_rows = bs // pack                      # rows of the lane-packed output

    def kernel(x_ref, w_ref, p_ref, out_ref):
        x = x_ref[...].astype(jnp.float32)     # (BS, D) activations, f32
        w = w_ref[...]                         # (3D+FF, 128) bf16 weight slab
        p = p_ref[...]                         # (8, 128)     f32 bias/LN slab

        # ---- static slices of the packed weight slab (row offsets % 16 == 0)
        wqkv = w[0:d_model, :]                           # (D, 128) q|k|v|pad
        wo_t = w[d_model:2 * d_model, 0:d_model]         # (D, D)
        w1_t = w[2 * d_model:3 * d_model, 0:dim_ff]      # (D, FF)
        w2_t = w[3 * d_model:3 * d_model + dim_ff, 0:d_model]  # (FF, D)

        # ---- biases / LayerNorm params: broadcast ONCE, outside the layer loop
        def row(i, width):
            return jnp.broadcast_to(p[i:i + 1, 0:width], (bs, width))

        bqkv_b = row(0, w.shape[1])            # full 128 lanes; pad lanes are 0
        bo_b, b1_b, b2_b = row(1, d_model), row(2, dim_ff), row(3, d_model)
        g1_b, be1_b = row(4, d_model), row(5, d_model)
        g2_b, be2_b = row(6, d_model), row(7, d_model)

        def layer_norm(t, g, b):
            mu = jnp.mean(t, axis=-1, keepdims=True)
            var = jnp.mean((t - mu) ** 2, axis=-1, keepdims=True)
            return (t - mu) * lax.rsqrt(var + LN_EPS) * g + b

        # Cloned layers share parameters -> static unrolled loop, same weights.
        for layer in range(num_layers):
            # ---- fused QKV projection: ONE MXU op (bf16 in, f32 accumulate)
            qkv = jnp.dot(x.astype(jnp.bfloat16), wqkv,
                          preferred_element_type=jnp.float32) + bqkv_b  # (BS,128)

            # ---- gather heads into a single batch axis g = (head, batch)
            def to_heads(base):
                return jnp.concatenate(
                    [qkv[:, base + h * hd: base + (h + 1) * hd]
                     .reshape(batch, seq, hd) for h in range(num_heads)],
                    axis=0)                                   # (H*B, S, hd)

            qh = to_heads(0)
            kh = to_heads(d_model)
            vh = to_heads(2 * d_model)

            # ---- one batched score einsum + softmax + one context einsum
            s = jnp.einsum('gqd,gkd->gqk', qh, kh,
                           preferred_element_type=jnp.float32)
            s = s - jnp.max(s, axis=-1, keepdims=True)
            e = jnp.exp(s)
            probs = e * pl.reciprocal(jnp.sum(e, axis=-1, keepdims=True),
                                      approx=True)
            ctx = jnp.einsum('gqk,gkd->gqd', probs, vh,
                             preferred_element_type=jnp.float32)  # (H*B,S,hd)

            # ---- heads back into lanes -> single output projection dot
            ctx2 = jnp.concatenate(
                [ctx[h * batch:(h + 1) * batch].reshape(bs, hd)
                 for h in range(num_heads)], axis=1)              # (BS, D)
            attn = jnp.dot(ctx2.astype(jnp.bfloat16), wo_t,
                           preferred_element_type=jnp.float32) + bo_b

            # ---- residual + LayerNorm1
            x1 = layer_norm(x + attn, g1_b, be1_b)

            # ---- feed-forward (relu) + residual + LayerNorm2
            hid = jnp.maximum(
                jnp.dot(x1.astype(jnp.bfloat16), w1_t,
                        preferred_element_type=jnp.float32) + b1_b, 0.0)
            ff = jnp.dot(hid.astype(jnp.bfloat16), w2_t,
                         preferred_element_type=jnp.float32) + b2_b
            x = layer_norm(x1 + ff, g2_b, be2_b)

            # ---- lane-dense store: (BS, D) -> (BS/pack, pack*D) = (4, 128)
            packed = jnp.concatenate(
                [x[j * out_rows:(j + 1) * out_rows, :] for j in range(pack)],
                axis=1)
            out_ref[layer] = packed.astype(out_ref.dtype)

    return kernel


# --------------------------------------------------------------------------
# Host-side parameter packing
# --------------------------------------------------------------------------
def prepare_params(params, num_heads=NUM_HEADS, lanes=LANES):
    """Pack all weights into two lane-dense slabs.

    wslab (bf16, (3D+FF, 128)): rows [0:D]    = [Wq^T*scale | Wk^T | Wv^T]
                                rows [D:2D]   = Wo^T
                                rows [2D:3D]  = W1^T
                                rows [3D:3D+FF] = W2^T         (lanes padded w/ 0)
    pslab (f32, (8, 128)): rows = bqkv(scaled q part), bo, b1, b2, g1, beta1,
                                  g2, beta2                    (lanes padded w/ 0)
    """
    (wqkv, bqkv, wo, bo, w1, b1, w2, b2, g1, beta1, g2, beta2) = params
    d = wo.shape[0]
    hd = d // num_heads
    scale = 1.0 / math.sqrt(hd)

    wq, wk, wv = wqkv[:d], wqkv[d:2 * d], wqkv[2 * d:]
    bq, bk, bv = bqkv[:, :d], bqkv[:, d:2 * d], bqkv[:, 2 * d:]

    wqkv_t = jnp.concatenate([wq.T * scale, wk.T, wv.T], axis=1)   # (D, 3D)
    bqkv_s = jnp.concatenate([bq * scale, bk, bv], axis=1)         # (1, 3D)

    def pad_l(a):
        return jnp.pad(a, ((0, 0), (0, lanes - a.shape[1])))

    wslab = jnp.concatenate(
        [pad_l(wqkv_t), pad_l(wo.T), pad_l(w1.T), pad_l(w2.T)],
        axis=0).astype(jnp.bfloat16)                     # (3D+FF, 128)
    pslab = jnp.concatenate(
        [pad_l(a) for a in (bqkv_s, bo, b1, b2, g1, beta1, g2, beta2)],
        axis=0).astype(jnp.float32)                      # (8, 128)
    return wslab, pslab


# --------------------------------------------------------------------------
# Wrapper matching _TransformerEncoder.forward (eval, mask=None, norm=None)
# --------------------------------------------------------------------------
def transformer_encoder(src_sbd, params, num_layers=NUM_LAYERS,
                        num_heads=NUM_HEADS):
    """src_sbd: (S, B, D) seq-first (PyTorch convention).
    Returns the list of per-layer outputs, each (S, B, D)."""
    S, B, D = src_sbd.shape
    bs = B * S
    dim_ff = params[4].shape[0]
    x_flat = jnp.transpose(src_sbd, (1, 0, 2)).reshape(bs, D).astype(jnp.float32)
    wslab, pslab = prepare_params(params, num_heads)

    # lane-dense output packing factor (4 here: (16,32) -> (4,128))
    pack = LANES // D if (LANES % D == 0 and bs % (LANES // D) == 0) else 1
    out_rows = bs // pack

    kernel = _make_encoder_kernel(num_layers, num_heads, B, S, D, dim_ff, pack)

    out = pl.pallas_call(
        kernel,
        out_shape=jax.ShapeDtypeStruct((num_layers, out_rows, pack * D),
                                       src_sbd.dtype),
        grid_spec=pltpu.PrefetchScalarGridSpec(
            num_scalar_prefetch=0,
            grid=(1,),
            in_specs=[pl.BlockSpec((bs, D), lambda i: (0, 0)),
                      pl.BlockSpec(wslab.shape, lambda i: (0, 0)),
                      pl.BlockSpec(pslab.shape, lambda i: (0, 0))],
            out_specs=pl.BlockSpec((num_layers, out_rows, pack * D),
                                   lambda i: (0, 0, 0)),
        ),
        compiler_params=pltpu.CompilerParams(
            dimension_semantics=("arbitrary",)),
    )(x_flat, wslab, pslab)

    # undo the lane packing + return to (L, S, B, D); cheap host-side reshapes
    flat = out.reshape(num_layers, out_rows, pack, D).transpose(0, 2, 1, 3)
    flat = flat.reshape(num_layers, bs, D)
    outs = flat.reshape(num_layers, B, S, D).transpose(0, 2, 1, 3)  # (L,S,B,D)
    return [outs[i] for i in range(num_layers)]


# --------------------------------------------------------------------------
# Pure-JAX f32 reference (mirrors PyTorch post-norm TransformerEncoderLayer)
# --------------------------------------------------------------------------
def _ref_layer_norm(x, g, b, eps=LN_EPS):
    mu = jnp.mean(x, axis=-1, keepdims=True)
    var = jnp.mean((x - mu) ** 2, axis=-1, keepdims=True)
    return (x - mu) / jnp.sqrt(var + eps) * g + b


def reference_encoder(src_sbd, params, num_layers, num_heads):
    (wqkv, bqkv, wo, bo, w1, b1, w2, b2, g1, beta1, g2, beta2) = params
    S, B, D = src_sbd.shape
    hd = D // num_heads
    x = src_sbd
    outs = []
    for _ in range(num_layers):
        qkv = x @ wqkv.T + bqkv[0]                       # (S, B, 3D)
        q, k, v = qkv[..., :D], qkv[..., D:2 * D], qkv[..., 2 * D:]

        def split(t):                                    # (S,B,D)->(B,H,S,hd)
            return t.reshape(S, B, num_heads, hd).transpose(1, 2, 0, 3)

        qh, kh, vh = split(q), split(k), split(v)
        s = jnp.einsum('bhqd,bhkd->bhqk', qh, kh) / math.sqrt(hd)
        p = jax.nn.softmax(s, axis=-1)
        ctx = jnp.einsum('bhqk,bhkd->bhqd', p, vh)
        ctx = ctx.transpose(2, 0, 1, 3).reshape(S, B, D)
        attn = ctx @ wo.T + bo[0]
        x1 = _ref_layer_norm(x + attn, g1[0], beta1[0])
        hid = jax.nn.relu(x1 @ w1.T + b1[0])
        ff = hid @ w2.T + b2[0]
        x = _ref_layer_norm(x1 + ff, g2[0], beta2[0])
        outs.append(x)
    return outs


# --------------------------------------------------------------------------
# Deterministic parameters in PyTorch layout (in_proj (3D, D), etc.)
# --------------------------------------------------------------------------
def init_params(key, d_model=D_MODEL, dim_ff=DIM_FF):
    ks = jax.random.split(key, 10)
    s = 0.02
    wqkv = s * jax.random.normal(ks[0], (3 * d_model, d_model), jnp.float32)
    bqkv = s * jax.random.normal(ks[1], (1, 3 * d_model), jnp.float32)
    wo = s * jax.random.normal(ks[2], (d_model, d_model), jnp.float32)
    bo = s * jax.random.normal(ks[3], (1, d_model), jnp.float32)
    w1 = s * jax.random.normal(ks[4], (dim_ff, d_model), jnp.float32)
    b1 = s * jax.random.normal(ks[5], (1, dim_ff), jnp.float32)
    w2 = s * jax.random.normal(ks[6], (d_model, dim_ff), jnp.float32)
    b2 = s * jax.random.normal(ks[7], (1, d_model), jnp.float32)
    g1 = 1.0 + 0.1 * jax.random.normal(ks[8], (1, d_model), jnp.float32)
    beta1 = 0.1 * jax.random.normal(ks[9], (1, d_model), jnp.float32)
    g2 = jnp.ones((1, d_model), jnp.float32)
    beta2 = jnp.zeros((1, d_model), jnp.float32)
    return (wqkv, bqkv, wo, bo, w1, b1, w2, b2, g1, beta1, g2, beta2)


if __name__ == "__main__":
    key = jax.random.PRNGKey(0)
    k_src, k_par = jax.random.split(key)
    # src: (S, B, D) -- PyTorch seq-first convention
    src = jax.random.normal(k_src, (SEQ, BATCH, D_MODEL), jnp.float32)
    params = init_params(k_par)

    outs = transformer_encoder(src, params, NUM_LAYERS, NUM_HEADS)
    outs = [jax.block_until_ready(o) for o in outs]

    # correctness vs. pure-JAX f32 reference (tolerance covers bf16 MXU inputs
    # and the approximate softmax reciprocal)
    refs = reference_encoder(src, params, NUM_LAYERS, NUM_HEADS)
    assert len(outs) == NUM_LAYERS
    for o, r in zip(outs, refs):
        assert o.shape == (SEQ, BATCH, D_MODEL)
        assert bool(jnp.all(jnp.isfinite(o)))
        err = float(jnp.max(jnp.abs(o - r)))
        assert err < 3e-2, f"mismatch vs reference: max abs err {err}"
    print("KERNEL_OK")
</pallas_src>

<mosaic_0001>
module attributes {stable_mosaic.version = 11 : i64} {
  func.func @kernel(%arg0: i32, %arg1: memref<16x32xf32, #tpu.memory_space<vmem>>, %arg2: memref<160x128xbf16, #tpu.memory_space<vmem>>, %arg3: memref<8x128xf32, #tpu.memory_space<vmem>>, %arg4: memref<2x4x128xf32, #tpu.memory_space<vmem>>) attributes {dimension_semantics = [#tpu.dimension_semantics<arbitrary>], iteration_bounds = array<i64: 1>, scalar_prefetch = 0 : i64, scratch_operands = 0 : i64, tpu.core_type = #tpu.core_type<tc>, window_params = [{pipeline_mode = #tpu.pipeline_mode<synchronous>, transform_indices = @transform_0, window_bounds = array<i64: 16, 32>}, {pipeline_mode = #tpu.pipeline_mode<synchronous>, transform_indices = @transform_1, window_bounds = array<i64: 160, 128>}, {pipeline_mode = #tpu.pipeline_mode<synchronous>, transform_indices = @transform_2, window_bounds = array<i64: 8, 128>}, {pipeline_mode = #tpu.pipeline_mode<synchronous>, transform_indices = @transform_3, window_bounds = array<i64: 2, 4, 128>}]} {
    %c0 = arith.constant 0 : index
    %c0_0 = arith.constant 0 : index
    %0 = vector.load %arg1[%c0, %c0_0] : memref<16x32xf32, #tpu.memory_space<vmem>>, vector<16x32xf32>
    %c0_1 = arith.constant 0 : index
    %c0_2 = arith.constant 0 : index
    %1 = vector.load %arg2[%c0_1, %c0_2] : memref<160x128xbf16, #tpu.memory_space<vmem>>, vector<160x128xbf16>
    %c0_3 = arith.constant 0 : index
    %c0_4 = arith.constant 0 : index
    %2 = vector.load %arg3[%c0_3, %c0_4] : memref<8x128xf32, #tpu.memory_space<vmem>>, vector<8x128xf32>
    %3 = vector.extract_strided_slice %1 {offsets = [0, 0], sizes = [32, 128], strides = [1, 1]} : vector<160x128xbf16> to vector<32x128xbf16>
    %4 = vector.extract_strided_slice %1 {offsets = [32, 0], sizes = [32, 32], strides = [1, 1]} : vector<160x128xbf16> to vector<32x32xbf16>
    %5 = vector.extract_strided_slice %1 {offsets = [64, 0], sizes = [32, 64], strides = [1, 1]} : vector<160x128xbf16> to vector<32x64xbf16>
    %6 = vector.extract_strided_slice %1 {offsets = [96, 0], sizes = [64, 32], strides = [1, 1]} : vector<160x128xbf16> to vector<64x32xbf16>
    %7 = vector.extract_strided_slice %2 {offsets = [0, 0], sizes = [1, 128], strides = [1, 1]} : vector<8x128xf32> to vector<1x128xf32>
    %8 = vector.shape_cast %7 : vector<1x128xf32> to vector<1x128xf32>
    %9 = vector.broadcast %8 : vector<1x128xf32> to vector<16x128xf32>
    %10 = vector.extract_strided_slice %2 {offsets = [1, 0], sizes = [1, 32], strides = [1, 1]} : vector<8x128xf32> to vector<1x32xf32>
    %11 = vector.shape_cast %10 : vector<1x32xf32> to vector<1x32xf32>
    %12 = vector.broadcast %11 : vector<1x32xf32> to vector<16x32xf32>
    %13 = vector.extract_strided_slice %2 {offsets = [2, 0], sizes = [1, 64], strides = [1, 1]} : vector<8x128xf32> to vector<1x64xf32>
    %14 = vector.shape_cast %13 : vector<1x64xf32> to vector<1x64xf32>
    %15 = vector.broadcast %14 : vector<1x64xf32> to vector<16x64xf32>
    %16 = vector.extract_strided_slice %2 {offsets = [3, 0], sizes = [1, 32], strides = [1, 1]} : vector<8x128xf32> to vector<1x32xf32>
    %17 = vector.shape_cast %16 : vector<1x32xf32> to vector<1x32xf32>
    %18 = vector.broadcast %17 : vector<1x32xf32> to vector<16x32xf32>
    %19 = vector.extract_strided_slice %2 {offsets = [4, 0], sizes = [1, 32], strides = [1, 1]} : vector<8x128xf32> to vector<1x32xf32>
    %20 = vector.shape_cast %19 : vector<1x32xf32> to vector<1x32xf32>
    %21 = vector.broadcast %20 : vector<1x32xf32> to vector<16x32xf32>
    %22 = vector.extract_strided_slice %2 {offsets = [5, 0], sizes = [1, 32], strides = [1, 1]} : vector<8x128xf32> to vector<1x32xf32>
    %23 = vector.shape_cast %22 : vector<1x32xf32> to vector<1x32xf32>
    %24 = vector.broadcast %23 : vector<1x32xf32> to vector<16x32xf32>
    %25 = vector.extract_strided_slice %2 {offsets = [6, 0], sizes = [1, 32], strides = [1, 1]} : vector<8x128xf32> to vector<1x32xf32>
    %26 = vector.shape_cast %25 : vector<1x32xf32> to vector<1x32xf32>
    %27 = vector.broadcast %26 : vector<1x32xf32> to vector<16x32xf32>
    %28 = vector.extract_strided_slice %2 {offsets = [7, 0], sizes = [1, 32], strides = [1, 1]} : vector<8x128xf32> to vector<1x32xf32>
    %29 = vector.shape_cast %28 : vector<1x32xf32> to vector<1x32xf32>
    %30 = vector.broadcast %29 : vector<1x32xf32> to vector<16x32xf32>
    %31 = arith.truncf %0 : vector<16x32xf32> to vector<16x32xbf16>
    %cst = arith.constant dense<0.000000e+00> : vector<16x128xf32>
    %32 = tpu.matmul %31, %3, %cst {dimension_numbers = #tpu.dot_dimension_numbers<[1], [0], [0], [1], [0, 0, 1, 1], [], []>} : vector<16x32xbf16>, vector<32x128xbf16>, vector<16x128xf32> -> vector<16x128xf32>
    %33 = arith.addf %32, %9 : vector<16x128xf32>
    %34 = vector.extract_strided_slice %33 {offsets = [0, 0], sizes = [16, 8], strides = [1, 1]} : vector<16x128xf32> to vector<16x8xf32>
    %35 = vector.shape_cast %34 : vector<16x8xf32> to vector<2x8x8xf32>
    %36 = vector.extract_strided_slice %33 {offsets = [0, 8], sizes = [16, 8], strides = [1, 1]} : vector<16x128xf32> to vector<16x8xf32>
    %37 = vector.shape_cast %36 : vector<16x8xf32> to vector<2x8x8xf32>
    %38 = vector.extract_strided_slice %33 {offsets = [0, 16], sizes = [16, 8], strides = [1, 1]} : vector<16x128xf32> to vector<16x8xf32>
    %39 = vector.shape_cast %38 : vector<16x8xf32> to vector<2x8x8xf32>
    %40 = vector.extract_strided_slice %33 {offsets = [0, 24], sizes = [16, 8], strides = [1, 1]} : vector<16x128xf32> to vector<16x8xf32>
    %41 = vector.shape_cast %40 : vector<16x8xf32> to vector<2x8x8xf32>
    %42 = tpu.concatenate %35, %37, %39, %41 in 0 : vector<2x8x8xf32>, vector<2x8x8xf32>, vector<2x8x8xf32>, vector<2x8x8xf32> -> vector<8x8x8xf32>
    %43 = vector.extract_strided_slice %33 {offsets = [0, 32], sizes = [16, 8], strides = [1, 1]} : vector<16x128xf32> to vector<16x8xf32>
    %44 = vector.shape_cast %43 : vector<16x8xf32> to vector<2x8x8xf32>
    %45 = vector.extract_strided_slice %33 {offsets = [0, 40], sizes = [16, 8], strides = [1, 1]} : vector<16x128xf32> to vector<16x8xf32>
    %46 = vector.shape_cast %45 : vector<16x8xf32> to vector<2x8x8xf32>
    %47 = vector.extract_strided_slice %33 {offsets = [0, 48], sizes = [16, 8], strides = [1, 1]} : vector<16x128xf32> to vector<16x8xf32>
    %48 = vector.shape_cast %47 : vector<16x8xf32> to vector<2x8x8xf32>
    %49 = vector.extract_strided_slice %33 {offsets = [0, 56], sizes = [16, 8], strides = [1, 1]} : vector<16x128xf32> to vector<16x8xf32>
    %50 = vector.shape_cast %49 : vector<16x8xf32> to vector<2x8x8xf32>
    %51 = tpu.concatenate %44, %46, %48, %50 in 0 : vector<2x8x8xf32>, vector<2x8x8xf32>, vector<2x8x8xf32>, vector<2x8x8xf32> -> vector<8x8x8xf32>
    %52 = vector.extract_strided_slice %33 {offsets = [0, 64], sizes = [16, 8], strides = [1, 1]} : vector<16x128xf32> to vector<16x8xf32>
    %53 = vector.shape_cast %52 : vector<16x8xf32> to vector<2x8x8xf32>
    %54 = vector.extract_strided_slice %33 {offsets = [0, 72], sizes = [16, 8], strides = [1, 1]} : vector<16x128xf32> to vector<16x8xf32>
    %55 = vector.shape_cast %54 : vector<16x8xf32> to vector<2x8x8xf32>
    %56 = vector.extract_strided_slice %33 {offsets = [0, 80], sizes = [16, 8], strides = [1, 1]} : vector<16x128xf32> to vector<16x8xf32>
    %57 = vector.shape_cast %56 : vector<16x8xf32> to vector<2x8x8xf32>
    %58 = vector.extract_strided_slice %33 {offsets = [0, 88], sizes = [16, 8], strides = [1, 1]} : vector<16x128xf32> to vector<16x8xf32>
    %59 = vector.shape_cast %58 : vector<16x8xf32> to vector<2x8x8xf32>
    %60 = tpu.concatenate %53, %55, %57, %59 in 0 : vector<2x8x8xf32>, vector<2x8x8xf32>, vector<2x8x8xf32>, vector<2x8x8xf32> -> vector<8x8x8xf32>
    "tpu.trace_start"() <{level = 10 : i32, message = "gqd,gkd->gqk"}> : () -> ()
    %cst_5 = arith.constant dense<0.000000e+00> : vector<8x8x8xf32>
    %61 = tpu.matmul %42, %51, %cst_5 {dimension_numbers = #tpu.dot_dimension_numbers<[2], [2], [1], [1], [0, 0, 0, 1, 1, 1], [0], [0]>} : vector<8x8x8xf32>, vector<8x8x8xf32>, vector<8x8x8xf32> -> vector<8x8x8xf32>
    "tpu.trace_stop"() : () -> ()
    %cst_6 = arith.constant dense<0xFF800000> : vector<8x8xf32>
    %62 = vector.multi_reduction <maximumf>, %61, %cst_6 [2] : vector<8x8x8xf32> to vector<8x8xf32>
    %63 = vector.shape_cast %62 : vector<8x8xf32> to vector<8x8x1xf32>
    %64 = vector.broadcast %63 : vector<8x8x1xf32> to vector<8x8x8xf32>
    %65 = arith.subf %61, %64 : vector<8x8x8xf32>
    %66 = math.exp %65 : vector<8x8x8xf32>
    %cst_7 = arith.constant dense<0.000000e+00> : vector<8x8xf32>
    %67 = vector.multi_reduction <add>, %66, %cst_7 [2] : vector<8x8x8xf32> to vector<8x8xf32>
    %68 = vector.shape_cast %67 : vector<8x8xf32> to vector<8x8x1xf32>
    %69 = tpu.reciprocal %68 {approx = true} : vector<8x8x1xf32> -> vector<8x8x1xf32>
    %70 = vector.broadcast %69 : vector<8x8x1xf32> to vector<8x8x8xf32>
    %71 = arith.mulf %66, %70 : vector<8x8x8xf32>
    "tpu.trace_start"() <{level = 10 : i32, message = "gqk,gkd->gqd"}> : () -> ()
    %cst_8 = arith.constant dense<0.000000e+00> : vector<8x8x8xf32>
    %72 = tpu.matmul %71, %60, %cst_8 {dimension_numbers = #tpu.dot_dimension_numbers<[2], [1], [1], [2], [0, 0, 0, 1, 1, 2], [0], [0]>} : vector<8x8x8xf32>, vector<8x8x8xf32>, vector<8x8x8xf32> -> vector<8x8x8xf32>
    "tpu.trace_stop"() : () -> ()
    %73 = vector.extract_strided_slice %72 {offsets = [0, 0, 0], sizes = [2, 8, 8], strides = [1, 1, 1]} : vector<8x8x8xf32> to vector<2x8x8xf32>
    %74 = vector.shape_cast %73 : vector<2x8x8xf32> to vector<16x8xf32>
    %75 = vector.extract_strided_slice %72 {offsets = [2, 0, 0], sizes = [2, 8, 8], strides = [1, 1, 1]} : vector<8x8x8xf32> to vector<2x8x8xf32>
    %76 = vector.shape_cast %75 : vector<2x8x8xf32> to vector<16x8xf32>
    %77 = vector.extract_strided_slice %72 {offsets = [4, 0, 0], sizes = [2, 8, 8], strides = [1, 1, 1]} : vector<8x8x8xf32> to vector<2x8x8xf32>
    %78 = vector.shape_cast %77 : vector<2x8x8xf32> to vector<16x8xf32>
    %79 = vector.extract_strided_slice %72 {offsets = [6, 0, 0], sizes = [2, 8, 8], strides = [1, 1, 1]} : vector<8x8x8xf32> to vector<2x8x8xf32>
    %80 = vector.shape_cast %79 : vector<2x8x8xf32> to vector<16x8xf32>
    %81 = tpu.concatenate %74, %76, %78, %80 in 1 : vector<16x8xf32>, vector<16x8xf32>, vector<16x8xf32>, vector<16x8xf32> -> vector<16x32xf32>
    %82 = arith.truncf %81 : vector<16x32xf32> to vector<16x32xbf16>
    %cst_9 = arith.constant dense<0.000000e+00> : vector<16x32xf32>
    %83 = tpu.matmul %82, %4, %cst_9 {dimension_numbers = #tpu.dot_dimension_numbers<[1], [0], [0], [1], [0, 0, 1, 1], [], []>} : vector<16x32xbf16>, vector<32x32xbf16>, vector<16x32xf32> -> vector<16x32xf32>
    %84 = arith.addf %83, %12 : vector<16x32xf32>
    %85 = arith.addf %0, %84 : vector<16x32xf32>
    %cst_10 = arith.constant dense<0.000000e+00> : vector<16xf32>
    %86 = vector.multi_reduction <add>, %85, %cst_10 [1] : vector<16x32xf32> to vector<16xf32>
    %87 = vector.shape_cast %86 : vector<16xf32> to vector<16x1xf32>
    %cst_11 = arith.constant 3.200000e+01 : f32
    %88 = vector.broadcast %cst_11 : f32 to vector<16x1xf32>
    %89 = arith.divf %87, %88 : vector<16x1xf32>
    %90 = vector.broadcast %89 : vector<16x1xf32> to vector<16x32xf32>
    %91 = arith.subf %85, %90 : vector<16x32xf32>
    %92 = arith.mulf %91, %91 : vector<16x32xf32>
    %cst_12 = arith.constant dense<0.000000e+00> : vector<16xf32>
    %93 = vector.multi_reduction <add>, %92, %cst_12 [1] : vector<16x32xf32> to vector<16xf32>
    %94 = vector.shape_cast %93 : vector<16xf32> to vector<16x1xf32>
    %cst_13 = arith.constant 3.200000e+01 : f32
    %95 = vector.broadcast %cst_13 : f32 to vector<16x1xf32>
    %96 = arith.divf %94, %95 : vector<16x1xf32>
    %97 = vector.broadcast %89 : vector<16x1xf32> to vector<16x32xf32>
    %98 = arith.subf %85, %97 : vector<16x32xf32>
    %cst_14 = arith.constant 9.99999974E-6 : f32
    %99 = vector.broadcast %cst_14 : f32 to vector<16x1xf32>
    %100 = arith.addf %96, %99 : vector<16x1xf32>
    %101 = math.rsqrt %100 : vector<16x1xf32>
    %102 = vector.broadcast %101 : vector<16x1xf32> to vector<16x32xf32>
    %103 = arith.mulf %98, %102 : vector<16x32xf32>
    %104 = arith.mulf %103, %21 : vector<16x32xf32>
    %105 = arith.addf %104, %24 : vector<16x32xf32>
    %106 = arith.truncf %105 : vector<16x32xf32> to vector<16x32xbf16>
    %cst_15 = arith.constant dense<0.000000e+00> : vector<16x64xf32>
    %107 = tpu.matmul %106, %5, %cst_15 {dimension_numbers = #tpu.dot_dimension_numbers<[1], [0], [0], [1], [0, 0, 1, 1], [], []>} : vector<16x32xbf16>, vector<32x64xbf16>, vector<16x64xf32> -> vector<16x64xf32>
    %108 = arith.addf %107, %15 : vector<16x64xf32>
    %cst_16 = arith.constant 0.000000e+00 : f32
    %109 = vector.broadcast %cst_16 : f32 to vector<16x64xf32>
    %110 = arith.maximumf %108, %109 : vector<16x64xf32>
    %111 = arith.truncf %110 : vector<16x64xf32> to vector<16x64xbf16>
    %cst_17 = arith.constant dense<0.000000e+00> : vector<16x32xf32>
    %112 = tpu.matmul %111, %6, %cst_17 {dimension_numbers = #tpu.dot_dimension_numbers<[1], [0], [0], [1], [0, 0, 1, 1], [], []>} : vector<16x64xbf16>, vector<64x32xbf16>, vector<16x32xf32> -> vector<16x32xf32>
    %113 = arith.addf %112, %18 : vector<16x32xf32>
    %114 = arith.addf %105, %113 : vector<16x32xf32>
    %cst_18 = arith.constant dense<0.000000e+00> : vector<16xf32>
    %115 = vector.multi_reduction <add>, %114, %cst_18 [1] : vector<16x32xf32> to vector<16xf32>
    %116 = vector.shape_cast %115 : vector<16xf32> to vector<16x1xf32>
    %cst_19 = arith.constant 3.200000e+01 : f32
    %117 = vector.broadcast %cst_19 : f32 to vector<16x1xf32>
    %118 = arith.divf %116, %117 : vector<16x1xf32>
    %119 = vector.broadcast %118 : vector<16x1xf32> to vector<16x32xf32>
    %120 = arith.subf %114, %119 : vector<16x32xf32>
    %121 = arith.mulf %120, %120 : vector<16x32xf32>
    %cst_20 = arith.constant dense<0.000000e+00> : vector<16xf32>
    %122 = vector.multi_reduction <add>, %121, %cst_20 [1] : vector<16x32xf32> to vector<16xf32>
    %123 = vector.shape_cast %122 : vector<16xf32> to vector<16x1xf32>
    %cst_21 = arith.constant 3.200000e+01 : f32
    %124 = vector.broadcast %cst_21 : f32 to vector<16x1xf32>
    %125 = arith.divf %123, %124 : vector<16x1xf32>
    %126 = vector.broadcast %118 : vector<16x1xf32> to vector<16x32xf32>
    %127 = arith.subf %114, %126 : vector<16x32xf32>
    %cst_22 = arith.constant 9.99999974E-6 : f32
    %128 = vector.broadcast %cst_22 : f32 to vector<16x1xf32>
    %129 = arith.addf %125, %128 : vector<16x1xf32>
    %130 = math.rsqrt %129 : vector<16x1xf32>
    %131 = vector.broadcast %130 : vector<16x1xf32> to vector<16x32xf32>
    %132 = arith.mulf %127, %131 : vector<16x32xf32>
    %133 = arith.mulf %132, %27 : vector<16x32xf32>
    %134 = arith.addf %133, %30 : vector<16x32xf32>
    %135 = vector.extract_strided_slice %134 {offsets = [0, 0], sizes = [4, 32], strides = [1, 1]} : vector<16x32xf32> to vector<4x32xf32>
    %136 = vector.extract_strided_slice %134 {offsets = [4, 0], sizes = [4, 32], strides = [1, 1]} : vector<16x32xf32> to vector<4x32xf32>
    %137 = vector.extract_strided_slice %134 {offsets = [8, 0], sizes = [4, 32], strides = [1, 1]} : vector<16x32xf32> to vector<4x32xf32>
    %138 = vector.extract_strided_slice %134 {offsets = [12, 0], sizes = [4, 32], strides = [1, 1]} : vector<16x32xf32> to vector<4x32xf32>
    %139 = tpu.concatenate %135, %136, %137, %138 in 1 : vector<4x32xf32>, vector<4x32xf32>, vector<4x32xf32>, vector<4x32xf32> -> vector<4x128xf32>
    %c0_23 = arith.constant 0 : index
    %c0_24 = arith.constant 0 : index
    %c0_25 = arith.constant 0 : index
    %140 = vector.load %arg4[%c0_23, %c0_24, %c0_25] : memref<2x4x128xf32, #tpu.memory_space<vmem>>, vector<1x4x128xf32>
    %141 = vector.shape_cast %140 : vector<1x4x128xf32> to vector<4x128xf32>
    %142 = vector.shape_cast %139 : vector<4x128xf32> to vector<1x4x128xf32>
    tpu.vector_store %arg4[%c0_23, %c0_24, %c0_25], %142 {strides = array<i32>} : memref<2x4x128xf32, #tpu.memory_space<vmem>>, vector<1x4x128xf32>,
    %143 = arith.truncf %134 : vector<16x32xf32> to vector<16x32xbf16>
    %cst_26 = arith.constant dense<0.000000e+00> : vector<16x128xf32>
    %144 = tpu.matmul %143, %3, %cst_26 {dimension_numbers = #tpu.dot_dimension_numbers<[1], [0], [0], [1], [0, 0, 1, 1], [], []>} : vector<16x32xbf16>, vector<32x128xbf16>, vector<16x128xf32> -> vector<16x128xf32>
    %145 = arith.addf %144, %9 : vector<16x128xf32>
    %146 = vector.extract_strided_slice %145 {offsets = [0, 0], sizes = [16, 8], strides = [1, 1]} : vector<16x128xf32> to vector<16x8xf32>
    %147 = vector.shape_cast %146 : vector<16x8xf32> to vector<2x8x8xf32>
    %148 = vector.extract_strided_slice %145 {offsets = [0, 8], sizes = [16, 8], strides = [1, 1]} : vector<16x128xf32> to vector<16x8xf32>
    %149 = vector.shape_cast %148 : vector<16x8xf32> to vector<2x8x8xf32>
    %150 = vector.extract_strided_slice %145 {offsets = [0, 16], sizes = [16, 8], strides = [1, 1]} : vector<16x128xf32> to vector<16x8xf32>
    %151 = vector.shape_cast %150 : vector<16x8xf32> to vector<2x8x8xf32>
    %152 = vector.extract_strided_slice %145 {offsets = [0, 24], sizes = [16, 8], strides = [1, 1]} : vector<16x128xf32> to vector<16x8xf32>
    %153 = vector.shape_cast %152 : vector<16x8xf32> to vector<2x8x8xf32>
    %154 = tpu.concatenate %147, %149, %151, %153 in 0 : vector<2x8x8xf32>, vector<2x8x8xf32>, vector<2x8x8xf32>, vector<2x8x8xf32> -> vector<8x8x8xf32>
    %155 = vector.extract_strided_slice %145 {offsets = [0, 32], sizes = [16, 8], strides = [1, 1]} : vector<16x128xf32> to vector<16x8xf32>
    %156 = vector.shape_cast %155 : vector<16x8xf32> to vector<2x8x8xf32>
    %157 = vector.extract_strided_slice %145 {offsets = [0, 40], sizes = [16, 8], strides = [1, 1]} : vector<16x128xf32> to vector<16x8xf32>
    %158 = vector.shape_cast %157 : vector<16x8xf32> to vector<2x8x8xf32>
    %159 = vector.extract_strided_slice %145 {offsets = [0, 48], sizes = [16, 8], strides = [1, 1]} : vector<16x128xf32> to vector<16x8xf32>
    %160 = vector.shape_cast %159 : vector<16x8xf32> to vector<2x8x8xf32>
    %161 = vector.extract_strided_slice %145 {offsets = [0, 56], sizes = [16, 8], strides = [1, 1]} : vector<16x128xf32> to vector<16x8xf32>
    %162 = vector.shape_cast %161 : vector<16x8xf32> to vector<2x8x8xf32>
    %163 = tpu.concatenate %156, %158, %160, %162 in 0 : vector<2x8x8xf32>, vector<2x8x8xf32>, vector<2x8x8xf32>, vector<2x8x8xf32> -> vector<8x8x8xf32>
    %164 = vector.extract_strided_slice %145 {offsets = [0, 64], sizes = [16, 8], strides = [1, 1]} : vector<16x128xf32> to vector<16x8xf32>
    %165 = vector.shape_cast %164 : vector<16x8xf32> to vector<2x8x8xf32>
    %166 = vector.extract_strided_slice %145 {offsets = [0, 72], sizes = [16, 8], strides = [1, 1]} : vector<16x128xf32> to vector<16x8xf32>
    %167 = vector.shape_cast %166 : vector<16x8xf32> to vector<2x8x8xf32>
    %168 = vector.extract_strided_slice %145 {offsets = [0, 80], sizes = [16, 8], strides = [1, 1]} : vector<16x128xf32> to vector<16x8xf32>
    %169 = vector.shape_cast %168 : vector<16x8xf32> to vector<2x8x8xf32>
    %170 = vector.extract_strided_slice %145 {offsets = [0, 88], sizes = [16, 8], strides = [1, 1]} : vector<16x128xf32> to vector<16x8xf32>
    %171 = vector.shape_cast %170 : vector<16x8xf32> to vector<2x8x8xf32>
    %172 = tpu.concatenate %165, %167, %169, %171 in 0 : vector<2x8x8xf32>, vector<2x8x8xf32>, vector<2x8x8xf32>, vector<2x8x8xf32> -> vector<8x8x8xf32>
    "tpu.trace_start"() <{level = 10 : i32, message = "gqd,gkd->gqk"}> : () -> ()
    %cst_27 = arith.constant dense<0.000000e+00> : vector<8x8x8xf32>
    %173 = tpu.matmul %154, %163, %cst_27 {dimension_numbers = #tpu.dot_dimension_numbers<[2], [2], [1], [1], [0, 0, 0, 1, 1, 1], [0], [0]>} : vector<8x8x8xf32>, vector<8x8x8xf32>, vector<8x8x8xf32> -> vector<8x8x8xf32>
    "tpu.trace_stop"() : () -> ()
    %cst_28 = arith.constant dense<0xFF800000> : vector<8x8xf32>
    %174 = vector.multi_reduction <maximumf>, %173, %cst_28 [2] : vector<8x8x8xf32> to vector<8x8xf32>
    %175 = vector.shape_cast %174 : vector<8x8xf32> to vector<8x8x1xf32>
    %176 = vector.broadcast %175 : vector<8x8x1xf32> to vector<8x8x8xf32>
    %177 = arith.subf %173, %176 : vector<8x8x8xf32>
    %178 = math.exp %177 : vector<8x8x8xf32>
    %cst_29 = arith.constant dense<0.000000e+00> : vector<8x8xf32>
    %179 = vector.multi_reduction <add>, %178, %cst_29 [2] : vector<8x8x8xf32> to vector<8x8xf32>
    %180 = vector.shape_cast %179 : vector<8x8xf32> to vector<8x8x1xf32>
    %181 = tpu.reciprocal %180 {approx = true} : vector<8x8x1xf32> -> vector<8x8x1xf32>
    %182 = vector.broadcast %181 : vector<8x8x1xf32> to vector<8x8x8xf32>
    %183 = arith.mulf %178, %182 : vector<8x8x8xf32>
    "tpu.trace_start"() <{level = 10 : i32, message = "gqk,gkd->gqd"}> : () -> ()
    %cst_30 = arith.constant dense<0.000000e+00> : vector<8x8x8xf32>
    %184 = tpu.matmul %183, %172, %cst_30 {dimension_numbers = #tpu.dot_dimension_numbers<[2], [1], [1], [2], [0, 0, 0, 1, 1, 2], [0], [0]>} : vector<8x8x8xf32>, vector<8x8x8xf32>, vector<8x8x8xf32> -> vector<8x8x8xf32>
    "tpu.trace_stop"() : () -> ()
    %185 = vector.extract_strided_slice %184 {offsets = [0, 0, 0], sizes = [2, 8, 8], strides = [1, 1, 1]} : vector<8x8x8xf32> to vector<2x8x8xf32>
    %186 = vector.shape_cast %185 : vector<2x8x8xf32> to vector<16x8xf32>
    %187 = vector.extract_strided_slice %184 {offsets = [2, 0, 0], sizes = [2, 8, 8], strides = [1, 1, 1]} : vector<8x8x8xf32> to vector<2x8x8xf32>
    %188 = vector.shape_cast %187 : vector<2x8x8xf32> to vector<16x8xf32>
    %189 = vector.extract_strided_slice %184 {offsets = [4, 0, 0], sizes = [2, 8, 8], strides = [1, 1, 1]} : vector<8x8x8xf32> to vector<2x8x8xf32>
    %190 = vector.shape_cast %189 : vector<2x8x8xf32> to vector<16x8xf32>
    %191 = vector.extract_strided_slice %184 {offsets = [6, 0, 0], sizes = [2, 8, 8], strides = [1, 1, 1]} : vector<8x8x8xf32> to vector<2x8x8xf32>
    %192 = vector.shape_cast %191 : vector<2x8x8xf32> to vector<16x8xf32>
    %193 = tpu.concatenate %186, %188, %190, %192 in 1 : vector<16x8xf32>, vector<16x8xf32>, vector<16x8xf32>, vector<16x8xf32> -> vector<16x32xf32>
    %194 = arith.truncf %193 : vector<16x32xf32> to vector<16x32xbf16>
    %cst_31 = arith.constant dense<0.000000e+00> : vector<16x32xf32>
    %195 = tpu.matmul %194, %4, %cst_31 {dimension_numbers = #tpu.dot_dimension_numbers<[1], [0], [0], [1], [0, 0, 1, 1], [], []>} : vector<16x32xbf16>, vector<32x32xbf16>, vector<16x32xf32> -> vector<16x32xf32>
    %196 = arith.addf %195, %12 : vector<16x32xf32>
    %197 = arith.addf %134, %196 : vector<16x32xf32>
    %cst_32 = arith.constant dense<0.000000e+00> : vector<16xf32>
    %198 = vector.multi_reduction <add>, %197, %cst_32 [1] : vector<16x32xf32> to vector<16xf32>
    %199 = vector.shape_cast %198 : vector<16xf32> to vector<16x1xf32>
    %cst_33 = arith.constant 3.200000e+01 : f32
    %200 = vector.broadcast %cst_33 : f32 to vector<16x1xf32>
    %201 = arith.divf %199, %200 : vector<16x1xf32>
    %202 = vector.broadcast %201 : vector<16x1xf32> to vector<16x32xf32>
    %203 = arith.subf %197, %202 : vector<16x32xf32>
    %204 = arith.mulf %203, %203 : vector<16x32xf32>
    %cst_34 = arith.constant dense<0.000000e+00> : vector<16xf32>
    %205 = vector.multi_reduction <add>, %204, %cst_34 [1] : vector<16x32xf32> to vector<16xf32>
    %206 = vector.shape_cast %205 : vector<16xf32> to vector<16x1xf32>
    %cst_35 = arith.constant 3.200000e+01 : f32
    %207 = vector.broadcast %cst_35 : f32 to vector<16x1xf32>
    %208 = arith.divf %206, %207 : vector<16x1xf32>
    %209 = vector.broadcast %201 : vector<16x1xf32> to vector<16x32xf32>
    %210 = arith.subf %197, %209 : vector<16x32xf32>
    %cst_36 = arith.constant 9.99999974E-6 : f32
    %211 = vector.broadcast %cst_36 : f32 to vector<16x1xf32>
    %212 = arith.addf %208, %211 : vector<16x1xf32>
    %213 = math.rsqrt %212 : vector<16x1xf32>
    %214 = vector.broadcast %213 : vector<16x1xf32> to vector<16x32xf32>
    %215 = arith.mulf %210, %214 : vector<16x32xf32>
    %216 = arith.mulf %215, %21 : vector<16x32xf32>
    %217 = arith.addf %216, %24 : vector<16x32xf32>
    %218 = arith.truncf %217 : vector<16x32xf32> to vector<16x32xbf16>
    %cst_37 = arith.constant dense<0.000000e+00> : vector<16x64xf32>
    %219 = tpu.matmul %218, %5, %cst_37 {dimension_numbers = #tpu.dot_dimension_numbers<[1], [0], [0], [1], [0, 0, 1, 1], [], []>} : vector<16x32xbf16>, vector<32x64xbf16>, vector<16x64xf32> -> vector<16x64xf32>
    %220 = arith.addf %219, %15 : vector<16x64xf32>
    %cst_38 = arith.constant 0.000000e+00 : f32
    %221 = vector.broadcast %cst_38 : f32 to vector<16x64xf32>
    %222 = arith.maximumf %220, %221 : vector<16x64xf32>
    %223 = arith.truncf %222 : vector<16x64xf32> to vector<16x64xbf16>
    %cst_39 = arith.constant dense<0.000000e+00> : vector<16x32xf32>
    %224 = tpu.matmul %223, %6, %cst_39 {dimension_numbers = #tpu.dot_dimension_numbers<[1], [0], [0], [1], [0, 0, 1, 1], [], []>} : vector<16x64xbf16>, vector<64x32xbf16>, vector<16x32xf32> -> vector<16x32xf32>
    %225 = arith.addf %224, %18 : vector<16x32xf32>
    %226 = arith.addf %217, %225 : vector<16x32xf32>
    %cst_40 = arith.constant dense<0.000000e+00> : vector<16xf32>
    %227 = vector.multi_reduction <add>, %226, %cst_40 [1] : vector<16x32xf32> to vector<16xf32>
    %228 = vector.shape_cast %227 : vector<16xf32> to vector<16x1xf32>
    %cst_41 = arith.constant 3.200000e+01 : f32
    %229 = vector.broadcast %cst_41 : f32 to vector<16x1xf32>
    %230 = arith.divf %228, %229 : vector<16x1xf32>
    %231 = vector.broadcast %230 : vector<16x1xf32> to vector<16x32xf32>
    %232 = arith.subf %226, %231 : vector<16x32xf32>
    %233 = arith.mulf %232, %232 : vector<16x32xf32>
    %cst_42 = arith.constant dense<0.000000e+00> : vector<16xf32>
    %234 = vector.multi_reduction <add>, %233, %cst_42 [1] : vector<16x32xf32> to vector<16xf32>
    %235 = vector.shape_cast %234 : vector<16xf32> to vector<16x1xf32>
    %cst_43 = arith.constant 3.200000e+01 : f32
    %236 = vector.broadcast %cst_43 : f32 to vector<16x1xf32>
    %237 = arith.divf %235, %236 : vector<16x1xf32>
    %238 = vector.broadcast %230 : vector<16x1xf32> to vector<16x32xf32>
    %239 = arith.subf %226, %238 : vector<16x32xf32>
    %cst_44 = arith.constant 9.99999974E-6 : f32
    %240 = vector.broadcast %cst_44 : f32 to vector<16x1xf32>
    %241 = arith.addf %237, %240 : vector<16x1xf32>
    %242 = math.rsqrt %241 : vector<16x1xf32>
    %243 = vector.broadcast %242 : vector<16x1xf32> to vector<16x32xf32>
    %244 = arith.mulf %239, %243 : vector<16x32xf32>
    %245 = arith.mulf %244, %27 : vector<16x32xf32>
    %246 = arith.addf %245, %30 : vector<16x32xf32>
    %247 = vector.extract_strided_slice %246 {offsets = [0, 0], sizes = [4, 32], strides = [1, 1]} : vector<16x32xf32> to vector<4x32xf32>
    %248 = vector.extract_strided_slice %246 {offsets = [4, 0], sizes = [4, 32], strides = [1, 1]} : vector<16x32xf32> to vector<4x32xf32>
    %249 = vector.extract_strided_slice %246 {offsets = [8, 0], sizes = [4, 32], strides = [1, 1]} : vector<16x32xf32> to vector<4x32xf32>
    %250 = vector.extract_strided_slice %246 {offsets = [12, 0], sizes = [4, 32], strides = [1, 1]} : vector<16x32xf32> to vector<4x32xf32>
    %251 = tpu.concatenate %247, %248, %249, %250 in 1 : vector<4x32xf32>, vector<4x32xf32>, vector<4x32xf32>, vector<4x32xf32> -> vector<4x128xf32>
    %c1 = arith.constant 1 : index
    %c0_45 = arith.constant 0 : index
    %c0_46 = arith.constant 0 : index
    %252 = vector.load %arg4[%c1, %c0_45, %c0_46] : memref<2x4x128xf32, #tpu.memory_space<vmem>>, vector<1x4x128xf32>
    %253 = vector.shape_cast %252 : vector<1x4x128xf32> to vector<4x128xf32>
    %254 = vector.shape_cast %251 : vector<4x128xf32> to vector<1x4x128xf32>
    tpu.vector_store %arg4[%c1, %c0_45, %c0_46], %254 {strides = array<i32>} : memref<2x4x128xf32, #tpu.memory_space<vmem>>, vector<1x4x128xf32>,
    return
  }
  func.func @transform_0(%arg0: i32) -> (i32, i32) {
    %c0_i32 = arith.constant 0 : i32
    %c0_i32_0 = arith.constant 0 : i32
    %c0_i32_1 = arith.constant 0 : i32
    return %c0_i32, %c0_i32_0 : i32, i32
  }
  func.func @transform_1(%arg0: i32) -> (i32, i32) {
    %c0_i32 = arith.constant 0 : i32
    %c0_i32_0 = arith.constant 0 : i32
    %c0_i32_1 = arith.constant 0 : i32
    return %c0_i32, %c0_i32_0 : i32, i32
  }
  func.func @transform_2(%arg0: i32) -> (i32, i32) {
    %c0_i32 = arith.constant 0 : i32
    %c0_i32_0 = arith.constant 0 : i32
    %c0_i32_1 = arith.constant 0 : i32
    return %c0_i32, %c0_i32_0 : i32, i32
  }
  func.func @transform_3(%arg0: i32) -> (i32, i32, i32) {
    %c0_i32 = arith.constant 0 : i32
    %c0_i32_0 = arith.constant 0 : i32
    %c0_i32_1 = arith.constant 0 : i32
    %c0_i32_2 = arith.constant 0 : i32
    return %c0_i32, %c0_i32_0, %c0_i32_1 : i32, i32, i32
  }
}

</mosaic_0001>

<bundles_post_ra>
// kernel: tpu_custom_call.1
= control target key start
LH: loop header
LB: loop body
LE: loop exit
PB: predicated region body
PF: predicated region fallthrough
CT: control target
= control target key end

     0   :  { %8 = vsyncpa [#allocation3], 0  ;;  %s4685_s0 = inlined_call_operand.hbm [shape: f32[16,32], index: 0, kind: input, shape index: {}]   ;;  %s4686_s1 = inlined_call_operand.hbm [shape: bf16[160,128], index: 1, kind: input, shape index: {}]   ;;  %s4687_s2 = inlined_call_operand.hbm [shape: f32[8,128], index: 2, kind: input, shape index: {}]   ;;  %s4688_s3 = inlined_call_operand.hbm [shape: f32[2,4,128], index: 3, kind: output, shape index: {}]  }
   0x1   :  { %9 = vsyncpa [#allocation6], 0 }
   0x2   :  { %10 = vsyncpa [#allocation4], 0  ;;  %s4039_s12 = smov [#allocation5]   ;;  %s3945_s16 = scalar_lea.hbm %s4686_s1, 1280 }
   0x3   :  { %s28_s13 = sshll.u32 %s4039_s12, 4  ;;  %p3946_p0 = scmp.ne.s32.totalorder %s4686_s1, %s3945_s16  ;;  %s29_s13 = int_to_ptr.vmem [resolvable:$true] %s28_s13 }
   0x4   :  { %p3949_p1 = scmp.lt.u32.totalorder %s3945_s16, %s4686_s1 }
   0x6   :  { %p3951_p2 = pnand %p3949_p1, %p3946_p0 }
   0x8   :  { %3954 = shalt.err (!%p3951_p2)
}
   0x9   :  { %s3955_s21 = scalar_lea.vmem %s29_s13, 1280  ;;  %p3960_p4 = scmp.lt.s32.totalorder %s29_s13, %s29_s13 }
   0xa   :  { %p3956_p3 = scmp.ne.s32.totalorder %s29_s13, %s3955_s21  ;;  %p3961_p5 = scmp.lt.s32.totalorder %s3955_s21, %s3955_s21 }
   0xc   :  { %p3962_p6 = por %p3961_p5, %p3960_p4 }
   0xe   :  { %p3963_p7 = pnand %p3962_p6, %p3956_p3 }
  0x10   :  { %3966 = shalt.err (!%p3963_p7)
}
  0x11   :  { %s4040_s22 = smov 64   ;;  %s4041_s23 = smov 4  }
  0x12   :  { %34 = dma.hbm_to_vmem [thread:$0]  %s4686_s1, 1280, %s29_s13, [#allocation6], %s4040_s22, %s4040_s22, %s4041_s23  }
  0x13   :  { %s4042_s26 = smov [#allocation2]   ;;  %s3967_s30 = scalar_lea.hbm %s4685_s0, 256 }
  0x14   :  { %s16_s27 = sshll.u32 %s4042_s26, 4  ;;  %p3968_p8 = scmp.ne.s32.totalorder %s4685_s0, %s3967_s30  ;;  %s17_s27 = int_to_ptr.vmem [resolvable:$true] %s16_s27 }
  0x15   :  { %p3971_p9 = scmp.lt.u32.totalorder %s3967_s30, %s4685_s0 }
  0x17   :  { %p3973_p10 = pnand %p3971_p9, %p3968_p8 }
  0x19   :  { %3976 = shalt.err (!%p3973_p10)
}
  0x1a   :  { %s3977_s8 = scalar_lea.vmem %s17_s27, 256  ;;  %p3982_p12 = scmp.lt.s32.totalorder %s17_s27, %s17_s27 }
  0x1b   :  { %p3978_p11 = scmp.ne.s32.totalorder %s17_s27, %s3977_s8  ;;  %p3983_p13 = scmp.lt.s32.totalorder %s3977_s8, %s3977_s8 }
  0x1d   :  { %p3984_p0 = por %p3983_p13, %p3982_p12 }
  0x1f   :  { %p3985_p1 = pnand %p3984_p0, %p3978_p11 }
  0x21   :  { %3988 = shalt.err (!%p3985_p1)
}
  0x22   :  { %s4043_s1 = smov 128   ;;  %s4044_s9 = smov 8  }
  0x23   :  { %22 = dma.hbm_to_vmem [thread:$0]  %s4685_s0, 256, %s17_s27, [#allocation3], %s4043_s1, %s4043_s1, %s4044_s9  }
  0x24   :  { %s4045_s12 = smov [#allocation7]   ;;  %s3989_s16 = scalar_lea.hbm %s4687_s2, 128 }
  0x25   :  { %s41_s13 = sshll.u32 %s4045_s12, 4  ;;  %p3990_p2 = scmp.ne.s32.totalorder %s4687_s2, %s3989_s16  ;;  %s42_s13 = int_to_ptr.vmem [resolvable:$true] %s41_s13 }
  0x26   :  { %p3993_p3 = scmp.lt.u32.totalorder %s3989_s16, %s4687_s2 }
  0x28   :  { %p3995_p4 = pnand %p3993_p3, %p3990_p2 }
  0x2a   :  { %3998 = shalt.err (!%p3995_p4)
}
  0x2b   :  { %s3999_s21 = scalar_lea.vmem %s42_s13, 128  ;;  %p4004_p6 = scmp.lt.s32.totalorder %s42_s13, %s42_s13 }
  0x2c   :  { %p4000_p5 = scmp.ne.s32.totalorder %s42_s13, %s3999_s21  ;;  %p4005_p7 = scmp.lt.s32.totalorder %s3999_s21, %s3999_s21 }
  0x2e   :  { %p4006_p8 = por %p4005_p7, %p4004_p6 }
  0x30   :  { %p4007_p9 = pnand %p4006_p8, %p4000_p5 }
  0x32   :  { %4010 = shalt.err (!%p4007_p9)
}
  0x33   :  { %44 = dma.hbm_to_vmem [thread:$0]  %s4687_s2, 128, %s42_s13, [#allocation6]  }
  0x34   :  { %4033 = dma.done.wait [#allocation3], 256  }
  0x35   :  { %4034 = vsyncadd [#allocation3], 4294967040 }
  0x36   :  { %4035 = dma.done.wait [#allocation6], 1408  }
  0x37   :  { %4036 = vsyncadd [#allocation6], 4294965888  ;;  %v4046_v0 = vmov 0.0   ;;  %vm4047_vm0 = vmmov 0   ;;  %v4122_v1 = vld [vmem:[#allocation5] sm:$0xff]   ;;  %v4125_v2 = vld [vmem:[#allocation5 + $0x8] sm:$0xff]   ;;  %v78_v6 = vlaneseq }
  0x38   :  { %3576 = vmatprep.subr.bf16.mxu0 %v4046_v0  ;;  %3580 = vmatprep.mubr.msk.bf16.mxu0 %vm4047_vm0, %v4046_v0  ;;  %v4127_v3 = vld [vmem:[#allocation2] sm:$0xff]  ;;  %v4129_v4 = vld [vmem:[#allocation2 + $0x8] sm:$0xff]  ;;  %vm123_vm1 = vcmask 261120   ;;  %s4048_s2 = smov 112   ;;  %s4049_s25 = smov 120   ;;  %vm184_vm2 = vcmask 64512  }
  0x39   :  { %3589 = vmatprep.subr.mxu1 %v4046_v0  ;;  %3591 = vmatprep.mubr.msk.f32.mxu1 %vm4047_vm0, %v4046_v0  ;;  %v110_v5 = vpack.c.bf16 %v4129_v4, %v4127_v3  ;;  %v4139_v7 = vshrl.u32 %v78_v6, 7  ;;  %v4142_v9 = vld [vmem:[#allocation7] sm:$0xff]  ;;  %s4050_s26 = smov 104   ;;  %s4051_s27 = smov 96   ;;  %vm1513_vm3 = vcmask 130048   ;;  %vm1516_vm4 = vcmask 195584  }
  0x3a   :  { %3577 = vmatpush3.bf16.msra.mxu0 %v4122_v1  ;;  %s4052_s28 = smov 16   ;;  %s4053_s29 = smov 24   ;;  %vm1693_vm5 = vcmask 523264   ;;  %vm1785_vm6 = vcmask 785408  }
  0x3b   :  { %3578 = vmatprep.subr.bf16.mxu0 %v4046_v0  ;;  %v80_v8 = vsub.s32 0, %v4139_v7  ;;  %s4054_s30 = smov 32   ;;  %s4055_s4 = smov [#allocation8]  }
  0x3c   :  { %s3405_s5 = sshll.u32 %s4055_s4, 4  ;;  %s3406_s5 = int_to_ptr.vmem [resolvable:$true] %s3405_s5 }
  0x3d   :  { %v4145_v10 = vrot.slane %v4142_v9, %v80_v8  ;;  %s4011_s6 = scalar_lea.vmem %s3406_s5, 128  ;;  %p4016_p11 = scmp.lt.s32.totalorder %s3406_s5, %s3406_s5 }
  0x3e   :  { %3579 = vmatpush3.bf16.msra.mxu0 %v4125_v2  ;;  %p4012_p10 = scmp.ne.s32.totalorder %s3406_s5, %s4011_s6  ;;  %p4017_p12 = scmp.lt.s32.totalorder %s4011_s6, %s4011_s6 }
  0x3f   :  { %3584 = vmatprep.subr.mxu0 %v4046_v0 }
  0x40   :  { %p4018_p13 = por %p4017_p12, %p4016_p11 }
  0x41   :  { %3581 = vmatmul.mubr.msk.bf16.vlgmr.msra.gmra.mrb[0].mxu0 %vm123_vm1, %v110_v5 }
  0x42   :  { %3586 = vmatprep.mubr.msk.f32.mxu0 %vm4047_vm0, %v4046_v0  ;;  %p4019_p0 = pnand %p4018_p13, %p4012_p10 }
 0x114   :  { %v161_v11 = vpop.f32.mrb[0].mxu0 }
 0x115   :  { %v4148_v12 = vadd.f32 %v161_v11, %v4145_v10  ;;  %v3582_v13 = vpop.f32.mrb[1].mxu0 }
 0x116   :  { %v164_v14 = vpop.f32.mrb[2].mxu0 }
 0x117   :  { %174 = vrot.lane.b32.xlu1 %v4148_v12, %s4048_s2  ;;  %170 = vrot.lane.b32.xlu0 %v4148_v12, %s4049_s25  ;;  %v3583_v15 = vpop.f32.mrb[3].mxu0  ;;  %v4155_v16 = vadd.f32 %v164_v14, %v4145_v10 }
 0x11b   :  { %176 = vrot.lane.b32.xlu1 %v4155_v16, %s4048_s2  ;;  %172 = vrot.lane.b32.xlu0 %v4155_v16, %s4049_s25 }
 0x11f   :  { %180 = vrot.lane.b32.xlu1 %v4155_v16, %s4050_s26  ;;  %178 = vrot.lane.b32.xlu0 %v4148_v12, %s4050_s26 }
 0x123   :  { %259 = vrot.lane.b32.xlu1 %v4155_v16, %s4051_s27  ;;  %182 = vrot.lane.b32.xlu0 %v4148_v12, %s4051_s27 }
 0x189   :  { %v4169_v17 = vpop.permute.xlu1 %174  ;;  %v4171_v18 = vpop.permute.xlu0 %170 }
 0x18a   :  { %335 = vrot.lane.b32.xlu0 %v4171_v18, %s4051_s27 }
 0x18d   :  { %v4175_v19 = vpop.permute.xlu1 %176  ;;  %v4177_v20 = vpop.permute.xlu0 %172 }
 0x18e   :  { %487 = vrot.lane.b32.xlu0 %v4169_v17, %s4051_s27  ;;  %411 = vrot.lane.b32.xlu1 %v4177_v20, %s4051_s27 }
 0x191   :  { %v4183_v21 = vpop.permute.xlu1 %180  ;;  %v4185_v22 = vpop.permute.xlu0 %178 }
 0x192   :  { %563 = vrot.lane.b32.xlu1 %v4175_v19, %s4051_s27  ;;  %639 = vrot.lane.b32.xlu0 %v4185_v22, %s4051_s27 }
 0x195   :  { %v260_v23 = vpop.permute.xlu1 %259  ;;  %v183_v24 = vpop.permute.xlu0 %182 }
 0x196   :  { %3590 = vmatpush3.xpose.msk.msra.mxu1 %vm184_vm2, %v260_v23  ;;  %715 = vrot.lane.b32.xlu1 %v4183_v21, %s4051_s27 }
 0x197   :  { %3585 = vmatpush3.xpose.msk.msra.mxu0 %vm184_vm2, %v183_v24  ;;  %3594 = vmatprep.subr.mxu1 %v4046_v0 }
 0x198   :  { %3599 = vmatprep.subr.mxu0 %v4046_v0 }
 0x199   :  { %3592 = vmatmul.mubr.msk.f32.vlgmr.msra.gmra.mrb[0].mxu1 %vm184_vm2, %v4155_v16 }
 0x19a   :  { %3587 = vmatmul.mubr.msk.f32.vlgmr.msra.gmra.mrb[4].mxu0 %vm184_vm2, %v4148_v12  ;;  %3596 = vmatprep.mubr.msk.f32.mxu1 %vm4047_vm0, %v4046_v0 }
 0x19b   :  { %3601 = vmatprep.mubr.msk.f32.mxu0 %vm4047_vm0, %v4046_v0 }
 0x1fc   :  { %v336_v25 = vpop.permute.xlu0 %335 }
 0x1fd   :  { %3595 = vmatpush3.xpose.msk.msra.mxu1 %vm184_vm2, %v336_v25 }
 0x1fe   :  { %3604 = vmatprep.subr.mxu1 %v4046_v0 }
 0x200   :  { %v412_v26 = vpop.permute.xlu1 %411  ;;  %3597 = vmatmul.mubr.msk.f32.vlgmr.msra.gmra.mrb[2].mxu1 %vm184_vm2, %v4171_v18  ;;  %v488_v27 = vpop.permute.xlu0 %487 }
 0x201   :  { %3600 = vmatpush3.xpose.msk.msra.mxu0 %vm184_vm2, %v412_v26  ;;  %3605 = vmatpush3.xpose.msk.msra.mxu1 %vm184_vm2, %v488_v27 }
 0x202   :  { %3606 = vmatprep.mubr.msk.f32.mxu1 %vm4047_vm0, %v4046_v0  ;;  %3609 = vmatprep.subr.mxu0 %v4046_v0 }
 0x203   :  { %3614 = vmatprep.subr.mxu1 %v4046_v0 }
 0x204   :  { %v564_v28 = vpop.permute.xlu1 %563  ;;  %3602 = vmatmul.mubr.msk.f32.vlgmr.msra.gmra.mrb[6].mxu0 %vm184_vm2, %v4177_v20  ;;  %3607 = vmatmul.mubr.msk.f32.vlgmr.msra.gmra.mrb[4].mxu1 %vm184_vm2, %v4169_v17  ;;  %v640_v29 = vpop.permute.xlu0 %639 }
 0x205   :  { %3610 = vmatpush3.xpose.msk.msra.mxu0 %vm184_vm2, %v564_v28  ;;  %3615 = vmatpush3.xpose.msk.msra.mxu1 %vm184_vm2, %v640_v29 }
 0x206   :  { %3611 = vmatprep.mubr.msk.f32.mxu0 %vm4047_vm0, %v4046_v0  ;;  %3616 = vmatprep.mubr.msk.f32.mxu1 %vm4047_vm0, %v4046_v0 }
 0x207   :  { %3619 = vmatprep.subr.mxu0 %v4046_v0  ;;  %3624 = vmatprep.subr.mxu1 %v4046_v0 }
 0x208   :  { %v716_v30 = vpop.permute.xlu1 %715  ;;  %3612 = vmatmul.mubr.msk.f32.vlgmr.msra.gmra.mrb[8].mxu0 %vm184_vm2, %v4175_v19  ;;  %3617 = vmatmul.mubr.msk.f32.vlgmr.msra.gmra.mrb[6].mxu1 %vm184_vm2, %v4185_v22 }
 0x209   :  { %3620 = vmatpush3.xpose.msk.msra.mxu0 %vm184_vm2, %v716_v30  ;;  %3621 = vmatprep.mubr.msk.f32.mxu0 %vm4047_vm0, %v4046_v0 }
 0x20a   :  { %3629 = vmatprep.subr.mxu0 %v4046_v0  ;;  %3626 = vmatprep.mubr.msk.f32.mxu1 %vm4047_vm0, %v4046_v0 }
 0x20c   :  { %3622 = vmatmul.mubr.msk.f32.vlgmr.msra.gmra.mrb[10].mxu0 %vm184_vm2, %v4183_v21 }
 0x20d   :  { %3631 = vmatprep.mubr.msk.f32.mxu0 %vm4047_vm0, %v4046_v0 }
 0x26c   :  { %v331_v31 = vpop.f32.mrb[0].mxu1 }
 0x26d   :  { %v255_v32 = vpop.f32.mrb[4].mxu0  ;;  %v3593_v33 = vpop.f32.mrb[1].mxu1  ;;  %v794_v34 = vsel %vm184_vm2, %v331_v31, -inf }
 0x26e   :  { %v3588_v35 = vpop.f32.mrb[5].mxu0  ;;  %795 = vmax.xlane.f32.xlu1 %v794_v34  ;;  %v791_v36 = vsel %vm184_vm2, %v255_v32, -inf }
 0x26f   :  { %792 = vmax.xlane.f32.xlu0 %v791_v36 }
 0x2d3   :  { %v407_v37 = vpop.f32.mrb[2].mxu1 }
 0x2d4   :  { %v3598_v38 = vpop.f32.mrb[3].mxu1  ;;  %v797_v39 = vsel %vm184_vm2, %v407_v37, -inf }
 0x2d5   :  { %798 = vmax.xlane.f32.xlu0 %v797_v39 }
 0x2d7   :  { %v483_v40 = vpop.f32.mrb[6].mxu0  ;;  %v559_v41 = vpop.f32.mrb[4].mxu1 }
 0x2d8   :  { %v3603_v42 = vpop.f32.mrb[7].mxu0  ;;  %v3608_v43 = vpop.f32.mrb[5].mxu1  ;;  %v803_v44 = vsel %vm184_vm2, %v559_v41, -inf  ;;  %v800_v45 = vsel %vm184_vm2, %v483_v40, -inf }
 0x2d9   :  { %804 = vmax.xlane.f32.xlu1 %v803_v44  ;;  %801 = vmax.xlane.f32.xlu0 %v800_v45 }
 0x2db   :  { %v635_v46 = vpop.f32.mrb[8].mxu0  ;;  %v711_v47 = vpop.f32.mrb[6].mxu1 }
 0x2dc   :  { %v3613_v48 = vpop.f32.mrb[9].mxu0  ;;  %v3618_v49 = vpop.f32.mrb[7].mxu1  ;;  %v809_v50 = vsel %vm184_vm2, %v711_v47, -inf  ;;  %v806_v51 = vsel %vm184_vm2, %v635_v46, -inf }
 0x2dd   :  { %810 = vmax.xlane.f32.xlu1 %v809_v50  ;;  %807 = vmax.xlane.f32.xlu0 %v806_v51 }
 0x2df   :  { %v787_v52 = vpop.f32.mrb[10].mxu0 }
 0x2e0   :  { %v3623_v53 = vpop.f32.mrb[11].mxu0  ;;  %v812_v54 = vsel %vm184_vm2, %v787_v52, -inf }
 0x2e1   :  { %813 = vmax.xlane.f32.xlu0 %v812_v54 }
 0x2ee   :  { %879 = vrot.lane.b32.xlu1 %v4148_v12, %s4040_s22 }
 0x2f2   :  { %1031 = vrot.lane.b32.xlu1 %v4171_v18, %s4040_s22 }
 0x2f6   :  { %1107 = vrot.lane.b32.xlu1 %v4177_v20, %s4040_s22 }
 0x2f7   :  { %955 = vrot.lane.b32.xlu0 %v4155_v16, %s4040_s22 }
 0x2fa   :  { %1259 = vrot.lane.b32.xlu1 %v4175_v19, %s4040_s22 }
 0x2fb   :  { %1183 = vrot.lane.b32.xlu0 %v4169_v17, %s4040_s22  ;;  %v796_v55 = vpop.xlane.xlu1 %795 }
 0x2fc   :  { %v816_v56 = vsub.f32 %v331_v31, %v796_v55  ;;  %v793_v57 = vpop.xlane.xlu0 %792 }
 0x2fd   :  { %v815_v59 = vsub.f32 %v255_v32, %v793_v57 }
 0x2fe   :  { %v825_v58 = vmul.f32 1.442695, %v816_v56 }
 0x2ff   :  { %v823_v60 = vmul.f32 1.442695, %v815_v59 }
 0x300   :  { %3865 = vpow2.f32 %v825_v58 }
 0x301   :  { %3867 = vpow2.f32 %v823_v60 }
 0x30a   :  { %v4261_v61 = vpop.eup %3865 }
 0x30b   :  { %v842_v62 = vsel %vm184_vm2, %v4261_v61, 0.0  ;;  %v4265_v63 = vpop.eup %3867 }
 0x30c   :  { %v839_v5 = vsel %vm184_vm2, %v4265_v63, 0.0 }
 0x31a   :  { %843 = vadd.xlane.f32.xlu0 %v842_v62 }
 0x31e   :  { %840 = vadd.xlane.f32.xlu1 %v839_v5 }
 0x362   :  { %v799_v6 = vpop.xlane.xlu0 %798 }
 0x363   :  { %v817_v8 = vsub.f32 %v407_v37, %v799_v6 }
 0x365   :  { %v827_v11 = vmul.f32 1.442695, %v817_v8 }
 0x366   :  { %v805_v12 = vpop.xlane.xlu1 %804  ;;  %v802_v13 = vpop.xlane.xlu0 %801 }
 0x367   :  { %3869 = vpow2.f32 %v827_v11  ;;  %v819_v14 = vsub.f32 %v559_v41, %v805_v12  ;;  %v818_v15 = vsub.f32 %v483_v40, %v802_v13 }
 0x369   :  { %v831_v16 = vmul.f32 1.442695, %v819_v14  ;;  %v829_v17 = vmul.f32 1.442695, %v818_v15 }
 0x36a   :  { %v811_v18 = vpop.xlane.xlu1 %810  ;;  %v808_v19 = vpop.xlane.xlu0 %807 }
 0x36b   :  { %3871 = vpow2.f32 %v831_v16  ;;  %v821_v20 = vsub.f32 %v711_v47, %v811_v18  ;;  %v820_v23 = vsub.f32 %v635_v46, %v808_v19 }
 0x36c   :  { %3873 = vpow2.f32 %v829_v17 }
 0x36d   :  { %v835_v24 = vmul.f32 1.442695, %v821_v20  ;;  %v833_v25 = vmul.f32 1.442695, %v820_v23  ;;  %v4317_v20 = vld [vmem:[#allocation5 + $0x10] sm:$0xff]  }
 0x36e   :  { %v880_v26 = vpop.permute.xlu1 %879  ;;  %v814_v27 = vpop.xlane.xlu0 %813 }
 0x36f   :  { %3875 = vpow2.f32 %v835_v24  ;;  %v822_v28 = vsub.f32 %v787_v52, %v814_v27  ;;  %3625 = vmatpush3.msra.mxu1 %v880_v26 }
 0x370   :  { %3877 = vpow2.f32 %v833_v25  ;;  %3634 = vmatprep.subr.mxu1 %v4046_v0  ;;  %v4321_v25 = vld [vmem:[#allocation5 + $0x18] sm:$0xff]  }
 0x371   :  { %v3870_v29 = vpop.eup %3869  ;;  %v837_v30 = vmul.f32 1.442695, %v822_v28 }
 0x372   :  { %v956_v31 = vpop.permute.xlu0 %955  ;;  %v845_v32 = vsel %vm184_vm2, %v3870_v29, 0.0  ;;  %v1032_v43 = vpop.permute.xlu1 %1031 }
 0x373   :  { %3879 = vpow2.f32 %v837_v30  ;;  %846 = vadd.xlane.f32.xlu1 %v845_v32  ;;  %3630 = vmatpush3.msra.mxu0 %v956_v31 }
 0x374   :  { %3639 = vmatprep.subr.mxu0 %v4046_v0 }
 0x375   :  { %v3872_v33 = vpop.eup %3871 }
 0x376   :  { %v3874_v34 = vpop.eup %3873  ;;  %v851_v35 = vsel %vm184_vm2, %v3872_v33, 0.0  ;;  %v1108_v44 = vpop.permute.xlu1 %1107 }
 0x377   :  { %852 = vadd.xlane.f32.xlu1 %v851_v35  ;;  %v848_v36 = vsel %vm184_vm2, %v3874_v34, 0.0  ;;  %v1184_v45 = vpop.permute.xlu0 %1183 }
 0x378   :  { %849 = vadd.xlane.f32.xlu0 %v848_v36 }
 0x379   :  { %v3876_v37 = vpop.eup %3875 }
 0x37a   :  { %v3878_v38 = vpop.eup %3877  ;;  %v857_v39 = vsel %vm184_vm2, %v3876_v37, 0.0  ;;  %v1260_v46 = vpop.permute.xlu1 %1259 }
 0x37b   :  { %858 = vadd.xlane.f32.xlu1 %v857_v39  ;;  %v854_v40 = vsel %vm184_vm2, %v3878_v38, 0.0 }
 0x37c   :  { %855 = vadd.xlane.f32.xlu0 %v854_v40 }
 0x37d   :  { %v4276_v41 = vpop.eup %3879 }
 0x37e   :  { %v860_v42 = vsel %vm184_vm2, %v4276_v41, 0.0 }
 0x380   :  { %861 = vadd.xlane.f32.xlu0 %v860_v42 }
 0x38c   :  { %1411 = vrot.lane.b32.xlu1 %v4183_v21, %s4040_s22 }
 0x396   :  { %1335 = vrot.lane.b32.xlu0 %v4185_v22, %s4040_s22 }
 0x3a7   :  { %v844_v47 = vpop.xlane.xlu0 %843 }
 0x3a8   :  { %3881 = vrcp.f32 %v844_v47 }
 0x3ab   :  { %v841_v48 = vpop.xlane.xlu1 %840 }
 0x3ac   :  { %3883 = vrcp.f32 %v841_v48 }
 0x3b2   :  { %v3882_v49 = vpop.eup %3881 }
 0x3b3   :  { %v872_v50 = vmul.f32 %v3882_v49, %v4261_v61 }
 0x3b5   :  { %3632 = vmatmul.mubr.msk.f32.vlgmr.msra.gmra.mrb[12].mxu0 %vm184_vm2, %v872_v50 }
 0x3b6   :  { %v3884_v51 = vpop.eup %3883  ;;  %3640 = vmatpush3.msra.mxu0 %v1108_v44  ;;  %3641 = vmatprep.mubr.msk.f32.mxu0 %vm4047_vm0, %v4046_v0 }
 0x3b7   :  { %v871_v21 = vmul.f32 %v3884_v51, %v4265_v63  ;;  %3649 = vmatprep.subr.mxu0 %v4046_v0 }
 0x3b9   :  { %3627 = vmatmul.mubr.msk.f32.vlgmr.msra.gmra.mrb[8].mxu1 %vm184_vm2, %v871_v21 }
 0x3ba   :  { %3635 = vmatpush3.msra.mxu1 %v1032_v43  ;;  %3636 = vmatprep.mubr.msk.f32.mxu1 %vm4047_vm0, %v4046_v0 }
 0x3bb   :  { %3644 = vmatprep.subr.mxu1 %v4046_v0 }
 0x400   :  { %v847_v22 = vpop.xlane.xlu1 %846 }
 0x401   :  { %3885 = vrcp.f32 %v847_v22 }
 0x404   :  { %v853_v52 = vpop.xlane.xlu1 %852 }
 0x405   :  { %3887 = vrcp.f32 %v853_v52  ;;  %v850_v53 = vpop.xlane.xlu0 %849  ;;  %v84_v52 = vsub.s32 1, %v4139_v7 }
 0x406   :  { %3889 = vrcp.f32 %v850_v53 }
 0x407   :  { %v4339_v53 = vrot.slane %v4142_v9, %v84_v52  ;;  %v92_v52 = vsub.s32 3, %v4139_v7 }
 0x408   :  { %v859_v54 = vpop.xlane.xlu1 %858 }
 0x409   :  { %3891 = vrcp.f32 %v859_v54  ;;  %v856_v55 = vpop.xlane.xlu0 %855 }
 0x40a   :  { %3893 = vrcp.f32 %v856_v55 }
 0x40b   :  { %v3886_v56 = vpop.eup %3885 }
 0x40c   :  { %v873_v57 = vmul.f32 %v3886_v56, %v3870_v29  ;;  %v1412_v12 = vpop.permute.xlu1 %1411 }
 0x40d   :  { %v862_v58 = vpop.xlane.xlu0 %861 }
 0x40e   :  { %3895 = vrcp.f32 %v862_v58  ;;  %3637 = vmatmul.mubr.msk.f32.vlgmr.msra.gmra.mrb[10].mxu1 %vm184_vm2, %v873_v57 }
 0x40f   :  { %v3888_v59 = vpop.eup %3887  ;;  %3645 = vmatpush3.msra.mxu1 %v1184_v45  ;;  %3646 = vmatprep.mubr.msk.f32.mxu1 %vm4047_vm0, %v4046_v0 }
 0x410   :  { %v3890_v60 = vpop.eup %3889  ;;  %v875_v61 = vmul.f32 %v3888_v59, %v3872_v33  ;;  %3654 = vmatprep.subr.mxu1 %v4046_v0 }
 0x411   :  { %v874_v62 = vmul.f32 %v3890_v60, %v3874_v34  ;;  %v1336_v63 = vpop.permute.xlu0 %1335 }
 0x412   :  { %3647 = vmatmul.mubr.msk.f32.vlgmr.msra.gmra.mrb[12].mxu1 %vm184_vm2, %v875_v61 }
 0x413   :  { %v3892_v5 = vpop.eup %3891  ;;  %3642 = vmatmul.mubr.msk.f32.vlgmr.msra.gmra.mrb[14].mxu0 %vm184_vm2, %v874_v62  ;;  %3655 = vmatpush3.msra.mxu1 %v1336_v63 }
 0x414   :  { %v3894_v6 = vpop.eup %3893  ;;  %v877_v8 = vmul.f32 %v3892_v5, %v3876_v37  ;;  %3650 = vmatpush3.msra.mxu0 %v1260_v46  ;;  %3651 = vmatprep.mubr.msk.f32.mxu0 %vm4047_vm0, %v4046_v0 }
 0x415   :  { %v876_v11 = vmul.f32 %v3894_v6, %v3878_v38  ;;  %3656 = vmatprep.mubr.msk.f32.mxu1 %vm4047_vm0, %v4046_v0  ;;  %3659 = vmatprep.subr.mxu0 %v4046_v0 }
 0x416   :  { %3657 = vmatmul.mubr.msk.f32.vlgmr.msra.gmra.mrb[14].mxu1 %vm184_vm2, %v877_v8  ;;  %3664 = vmatprep.subr.bf16.mxu1 %v4046_v0 }
 0x417   :  { %3652 = vmatmul.mubr.msk.f32.vlgmr.msra.gmra.mrb[16].mxu0 %vm184_vm2, %v876_v11  ;;  %3668 = vmatprep.mubr.msk.bf16.mxu1 %vm4047_vm0, %v4046_v0 }
 0x418   :  { %v3896_v13 = vpop.eup %3895  ;;  %3660 = vmatpush3.msra.mxu0 %v1412_v12  ;;  %3661 = vmatprep.mubr.msk.f32.mxu0 %vm4047_vm0, %v4046_v0 }
 0x419   :  { %v878_v14 = vmul.f32 %v3896_v13, %v4276_v41  ;;  %3672 = vmatprep.subr.bf16.mxu0 %v4046_v0  ;;  %3665 = vmatpush3.bf16.msra.mxu1 %v4317_v20 }
 0x41a   :  { %3666 = vmatprep.subr.bf16.mxu1 %v4046_v0 }
 0x41b   :  { %3662 = vmatmul.mubr.msk.f32.vlgmr.msra.gmra.mrb[18].mxu0 %vm184_vm2, %v878_v14 }
 0x41c   :  { %3676 = vmatprep.mubr.msk.bf16.mxu0 %vm4047_vm0, %v4046_v0 }
 0x41d   :  { %3667 = vmatpush3.bf16.msra.mxu1 %v4321_v25 }
 0x41e   :  { %3680 = vmatprep.subr.bf16.mxu1 %v4046_v0 }
 0x488   :  { %v1027_v15 = vpop.f32.mrb[12].mxu0 }
 0x489   :  { %v3633_v16 = vpop.f32.mrb[13].mxu0 }
 0x48c   :  { %v951_v17 = vpop.f32.mrb[8].mxu1 }
 0x48d   :  { %v3628_v18 = vpop.f32.mrb[9].mxu1 }
 0x48e   :  { %v4357_v18 = vld [vmem:[#allocation5 + $0x30] sm:$0xff]  }
 0x4e1   :  { %v1103_v19 = vpop.f32.mrb[10].mxu1 }
 0x4e2   :  { %v3638_v23 = vpop.f32.mrb[11].mxu1 }
 0x4e5   :  { %v1255_v24 = vpop.f32.mrb[12].mxu1 }
 0x4e6   :  { %v1179_v26 = vpop.f32.mrb[14].mxu0  ;;  %v3648_v27 = vpop.f32.mrb[13].mxu1 }
 0x4e7   :  { %v3825_v28 = vpack.i.bf16 %v1179_v26, %v1103_v19  ;;  %v3643_v29 = vpop.f32.mrb[15].mxu0  ;;  %v4360_v19 = vld [vmem:[#allocation5 + $0x38] sm:$0xff]  }
 0x4e9   :  { %3826 = vrot.lane.b32.xlu0 %v3825_v28, %s4044_s9  ;;  %v1407_v30 = vpop.f32.mrb[14].mxu1 }
 0x4ea   :  { %v1331_v31 = vpop.f32.mrb[16].mxu0  ;;  %v3658_v32 = vpop.f32.mrb[15].mxu1 }
 0x4eb   :  { %v3830_v33 = vpack.i.bf16 %v1331_v31, %v1255_v24  ;;  %v3653_v34 = vpop.f32.mrb[17].mxu0  ;;  %v100_v32 = vsub.s32 5, %v4139_v7 }
 0x4ed   :  { %3831 = vrot.lane.b32.xlu1 %v3830_v33, %s4052_s28 }
 0x4ee   :  { %v1483_v35 = vpop.f32.mrb[18].mxu0 }
 0x4ef   :  { %v3835_v36 = vpack.i.bf16 %v1483_v35, %v1407_v30  ;;  %v3663_v37 = vpop.f32.mrb[19].mxu0  ;;  %v96_v30 = vsub.s32 4, %v4139_v7 }
 0x4f1   :  { %3836 = vrot.lane.b32.xlu0 %v3835_v36, %s4053_s29  ;;  %v4367_v31 = vrot.slane %v4142_v9, %v96_v30 }
 0x55b   :  { %v3827_v38 = vpop.permute.xlu0 %3826 }
 0x55c   :  { %v3829_v40 = vunpack.i.h.bf16 %v3827_v38  ;;  %v3828_v41 = vunpack.i.l.bf16 %v3827_v38  ;;  %v4372_v38 = vrot.slane %v4142_v9, %v100_v32  ;;  %v104_v32 = vsub.s32 6, %v4139_v7 }
 0x55e   :  { %v1512_v45 = vsel %vm184_vm2, %v1027_v15, %v3829_v40  ;;  %v1511_v46 = vsel %vm184_vm2, %v951_v17, %v3828_v41  ;;  %v4349_v17 = vld [vmem:[#allocation5 + $0x20] sm:$0xff]  }
 0x55f   :  { %v3832_v39 = vpop.permute.xlu1 %3831  ;;  %3673 = vmatpush3.bf16.msra.mxu0 %v4349_v17 }
 0x560   :  { %v3834_v42 = vunpack.i.h.bf16 %v3832_v39  ;;  %v3833_v43 = vunpack.i.l.bf16 %v3832_v39  ;;  %3674 = vmatprep.subr.bf16.mxu0 %v4046_v0 }
 0x562   :  { %v1515_v49 = vsel %vm1513_vm3, %v1512_v45, %v3834_v42  ;;  %v1514_v50 = vsel %vm1513_vm3, %v1511_v46, %v3833_v43  ;;  %v4384_v43 = vld [vmem:[#allocation5 + $0x40] sm:$0xff]  }
 0x563   :  { %v3837_v44 = vpop.permute.xlu0 %3836 }
 0x564   :  { %v3839_v47 = vunpack.i.h.bf16 %v3837_v44  ;;  %v3838_v48 = vunpack.i.l.bf16 %v3837_v44  ;;  %v4388_v44 = vld [vmem:[#allocation5 + $0x48] sm:$0xff]  }
 0x566   :  { %v1518_v51 = vsel %vm1516_vm4, %v1515_v49, %v3839_v47  ;;  %v1517_v21 = vsel %vm1516_vm4, %v1514_v50, %v3838_v48 }
 0x567   :  { %v1519_v22 = vpack.c.bf16 %v1518_v51, %v1517_v21 }
 0x569   :  { %3669 = vmatmul.mubr.msk.bf16.vlgmr.msra.gmra.mrb[16].mxu1 %vm123_vm1, %v1519_v22 }
 0x56a   :  { %3688 = vmatprep.mubr.msk.bf16.mxu1 %vm4047_vm0, %v4046_v0  ;;  %3681 = vmatpush3.bf16.msra.mxu1 %v4357_v18 }
 0x56b   :  { %3682 = vmatprep.subr.bf16.mxu1 %v4046_v0 }
 0x56e   :  { %3683 = vmatpush3.bf16.msra.mxu1 %v4360_v19 }
 0x56f   :  { %3684 = vmatprep.subr.bf16.mxu1 %v4046_v0 }
 0x572   :  { %3685 = vmatpush3.bf16.msra.mxu1 %v4384_v43 }
 0x573   :  { %3686 = vmatprep.subr.bf16.mxu1 %v4046_v0 }
 0x576   :  { %3687 = vmatpush3.bf16.msra.mxu1 %v4388_v44 }
 0x577   :  { %3710 = vmatprep.subr.mxu1 %v4046_v0 }
 0x63c   :  { %v1569_v54 = vpop.f32.mrb[16].mxu1 }
 0x63d   :  { %v1570_v55 = vadd.f32 %v1569_v54, %v4339_v53  ;;  %v3670_v56 = vpop.f32.mrb[17].mxu1  ;;  %v4403_v54 = vrot.slane %v4142_v9, %v92_v52 }
 0x63e   :  { %v1572_v57 = vpop.f32.mrb[18].mxu1 }
 0x63f   :  { %v1573_v58 = vadd.f32 %v1572_v57, %v4339_v53  ;;  %v3671_v59 = vpop.f32.mrb[19].mxu1  ;;  %v1576_v60 = vadd.f32 %v1570_v55, %v4127_v3 }
 0x641   :  { %v1578_v61 = vsel %vm123_vm1, %v1576_v60, 0.0  ;;  %v1577_v62 = vadd.f32 %v1573_v58, %v4129_v4  ;;  %v4352_v4 = vld [vmem:[#allocation5 + $0x28] sm:$0xff]  }
 0x642   :  { %1579 = vadd.xlane.f32.xlu1 %v1578_v61  ;;  %3675 = vmatpush3.bf16.msra.mxu0 %v4352_v4 }
 0x643   :  { %v1581_v63 = vsel %vm123_vm1, %v1577_v62, 0.0  ;;  %3692 = vmatprep.subr.bf16.mxu0 %v4046_v0 }
 0x644   :  { %1582 = vadd.xlane.f32.xlu0 %v1581_v63 }
 0x6cf   :  { %v1580_v5 = vpop.xlane.xlu1 %1579 }
 0x6d0   :  { %v1585_v6 = vmul.f32 0.03125, %v1580_v5 }
 0x6d1   :  { %v1583_v8 = vpop.xlane.xlu0 %1582 }
 0x6d2   :  { %v1587_v11 = vsub.f32 %v1576_v60, %v1585_v6  ;;  %v1586_v12 = vmul.f32 0.03125, %v1583_v8 }
 0x6d4   :  { %v1588_v13 = vsub.f32 %v1577_v62, %v1586_v12  ;;  %v1589_v14 = vmul.f32 %v1587_v11, %v1587_v11 }
 0x6d6   :  { %v1591_v15 = vsel %vm123_vm1, %v1589_v14, 0.0  ;;  %v1590_v16 = vmul.f32 %v1588_v13, %v1588_v13 }
 0x6d7   :  { %1592 = vadd.xlane.f32.xlu0 %v1591_v15 }
 0x6d8   :  { %v1594_v3 = vsel %vm123_vm1, %v1590_v16, 0.0 }
 0x6d9   :  { %1595 = vadd.xlane.f32.xlu1 %v1594_v3 }
 0x764   :  { %v1593_v23 = vpop.xlane.xlu0 %1592 }
 0x765   :  { %v1597_v24 = vmul.f32 0.03125, %v1593_v23 }
 0x766   :  { %v1596_v26 = vpop.xlane.xlu1 %1595 }
 0x767   :  { %v1599_v27 = vadd.f32 1e-05, %v1597_v24  ;;  %v1598_v28 = vmul.f32 0.03125, %v1596_v26 }
 0x769   :  { %3897 = vrsqrt.f32 %v1599_v27  ;;  %v1600_v29 = vadd.f32 1e-05, %v1598_v28 }
 0x76b   :  { %3899 = vrsqrt.f32 %v1600_v29 }
 0x773   :  { %v3898_v33 = vpop.eup %3897 }
 0x774   :  { %v1603_v34 = vmul.f32 %v3898_v33, %v1587_v11  ;;  %v4413_v33 = vrot.slane %v4142_v9, %v104_v32 }
 0x775   :  { %v3900_v35 = vpop.eup %3899 }
 0x776   :  { %v1605_v36 = vmul.f32 %v1603_v34, %v4367_v31  ;;  %v1604_v37 = vmul.f32 %v3900_v35, %v1588_v13  ;;  %v108_v34 = vsub.s32 7, %v4139_v7 }
 0x778   :  { %v1606_v39 = vmul.f32 %v1604_v37, %v4367_v31  ;;  %v1607_v40 = vadd.f32 %v1605_v36, %v4372_v38 }
 0x77a   :  { %v1608_v41 = vadd.f32 %v1606_v39, %v4372_v38  ;;  %v4417_v39 = vrot.slane %v4142_v9, %v108_v34 }
 0x77c   :  { %v1609_v42 = vpack.c.bf16 %v1608_v41, %v1607_v40 }
 0x77e   :  { %3677 = vmatmul.mubr.msk.bf16.vlgmr.msra.gmra.mrb[20].mxu0 %vm123_vm1, %v1609_v42 }
 0x77f   :  { %3693 = vmatpush3.bf16.msra.mxu0 %v4122_v1  ;;  %3696 = vmatprep.mubr.msk.bf16.mxu0 %vm4047_vm0, %v4046_v0  ;;  %v88_v1 = vsub.s32 2, %v4139_v7 }
 0x780   :  { %3694 = vmatprep.subr.bf16.mxu0 %v4046_v0 }
 0x781   :  { %v4394_v45 = vrot.slane %v4142_v9, %v88_v1 }
 0x783   :  { %3695 = vmatpush3.bf16.msra.mxu0 %v4125_v2 }
 0x784   :  { %3700 = vmatprep.subr.mxu0 %v4046_v0 }
 0x851   :  { %v1659_v2 = vpop.f32.mrb[20].mxu0 }
 0x852   :  { %v1660_v46 = vadd.f32 %v1659_v2, %v4394_v45  ;;  %v3678_v47 = vpop.f32.mrb[21].mxu0 }
 0x853   :  { %v1662_v48 = vpop.f32.mrb[22].mxu0 }
 0x854   :  { %v1663_v49 = vadd.f32 %v1662_v48, %v4394_v45  ;;  %v3679_v50 = vpop.f32.mrb[23].mxu0  ;;  %v1666_v51 = vmax.f32 %v1660_v46, 0.0 }
 0x856   :  { %v1667_v21 = vmax.f32 %v1663_v49, 0.0 }
 0x858   :  { %v1668_v22 = vpack.c.bf16 %v1667_v21, %v1666_v51 }
 0x85a   :  { %3689 = vmatmul.mubr.msk.bf16.vlgmr.msra.gmra.mrb[20].mxu1 %vm1693_vm5, %v1668_v22 }
 0x85b   :  { %3712 = vmatprep.mubr.msk.f32.mxu1 %vm4047_vm0, %v4046_v0 }
 0x92d   :  { %v1731_v55 = vpop.f32.mrb[20].mxu1 }
 0x92e   :  { %v1732_v56 = vadd.f32 %v1731_v55, %v4403_v54  ;;  %v3690_v57 = vpop.f32.mrb[21].mxu1 }
 0x92f   :  { %v1734_v58 = vpop.f32.mrb[22].mxu1 }
 0x930   :  { %v1735_v59 = vadd.f32 %v1734_v58, %v4403_v54  ;;  %v3691_v60 = vpop.f32.mrb[23].mxu1  ;;  %v1738_v61 = vadd.f32 %v1732_v56, %v1607_v40 }
 0x932   :  { %v1740_v62 = vsel %vm123_vm1, %v1738_v61, 0.0  ;;  %v1739_v63 = vadd.f32 %v1735_v59, %v1608_v41 }
 0x933   :  { %1741 = vadd.xlane.f32.xlu0 %v1740_v62 }
 0x934   :  { %v1743_v5 = vsel %vm123_vm1, %v1739_v63, 0.0 }
 0x935   :  { %1744 = vadd.xlane.f32.xlu1 %v1743_v5 }
 0x9c0   :  { %v1742_v6 = vpop.xlane.xlu0 %1741 }
 0x9c1   :  { %v1746_v8 = vmul.f32 0.03125, %v1742_v6 }
 0x9c2   :  { %v1745_v11 = vpop.xlane.xlu1 %1744 }
 0x9c3   :  { %v1748_v12 = vsub.f32 %v1738_v61, %v1746_v8  ;;  %v1747_v13 = vmul.f32 0.03125, %v1745_v11 }
 0x9c5   :  { %v1749_v14 = vsub.f32 %v1739_v63, %v1747_v13  ;;  %v1750_v15 = vmul.f32 %v1748_v12, %v1748_v12 }
 0x9c7   :  { %v1752_v16 = vsel %vm123_vm1, %v1750_v15, 0.0  ;;  %v1751_v3 = vmul.f32 %v1749_v14, %v1749_v14 }
 0x9c8   :  { %1753 = vadd.xlane.f32.xlu0 %v1752_v16 }
 0x9c9   :  { %v1755_v23 = vsel %vm123_vm1, %v1751_v3, 0.0 }
 0x9ca   :  { %1756 = vadd.xlane.f32.xlu1 %v1755_v23 }
 0xa55   :  { %v1754_v24 = vpop.xlane.xlu0 %1753 }
 0xa56   :  { %v1758_v26 = vmul.f32 0.03125, %v1754_v24 }
 0xa57   :  { %v1757_v27 = vpop.xlane.xlu1 %1756 }
 0xa58   :  { %v1760_v28 = vadd.f32 1e-05, %v1758_v26  ;;  %v1759_v29 = vmul.f32 0.03125, %v1757_v27 }
 0xa5a   :  { %3901 = vrsqrt.f32 %v1760_v28  ;;  %v1761_v30 = vadd.f32 1e-05, %v1759_v29 }
 0xa5c   :  { %3903 = vrsqrt.f32 %v1761_v30 }
 0xa64   :  { %v3902_v35 = vpop.eup %3901 }
 0xa65   :  { %v1764_v36 = vmul.f32 %v3902_v35, %v1748_v12 }
 0xa66   :  { %v3904_v37 = vpop.eup %3903 }
 0xa67   :  { %v1766_v40 = vmul.f32 %v1764_v36, %v4413_v33  ;;  %v1765_v41 = vmul.f32 %v3904_v37, %v1749_v14 }
 0xa69   :  { %v1767_v42 = vmul.f32 %v1765_v41, %v4413_v33  ;;  %v4422_v1 = vadd.f32 %v1766_v40, %v4417_v39 }
 0xa6b   :  { %v4425_v2 = vadd.f32 %v1767_v42, %v4417_v39 }
 0xa6d   :  { %v1788_v7 = vpack.c.bf16 %v4425_v2, %v4422_v1 }
 0xa6f   :  { %3697 = vmatmul.mubr.msk.bf16.vlgmr.msra.gmra.mrb[24].mxu0 %vm123_vm1, %v1788_v7 }
 0xa70   :  { %3702 = vmatprep.mubr.msk.f32.mxu0 %vm4047_vm0, %v4046_v0 }
 0xb42   :  { %v1826_v9 = vpop.f32.mrb[24].mxu0 }
 0xb43   :  { %v4433_v46 = vadd.f32 %v1826_v9, %v4145_v10  ;;  %v3698_v47 = vpop.f32.mrb[25].mxu0 }
 0xb44   :  { %v1829_v48 = vpop.f32.mrb[26].mxu0 }
 0xb45   :  { %v4436_v49 = vadd.f32 %v1829_v48, %v4145_v10  ;;  %1835 = vrot.lane.b32.xlu0 %v4433_v46, %s4049_s25  ;;  %v3699_v50 = vpop.f32.mrb[27].mxu0 }
 0xb47   :  { %1837 = vrot.lane.b32.xlu1 %v4436_v49, %s4049_s25 }
 0xb49   :  { %1841 = vrot.lane.b32.xlu0 %v4436_v49, %s4048_s2 }
 0xb4b   :  { %1839 = vrot.lane.b32.xlu1 %v4433_v46, %s4048_s2 }
 0xb4d   :  { %1845 = vrot.lane.b32.xlu0 %v4436_v49, %s4050_s26 }
 0xb4f   :  { %1843 = vrot.lane.b32.xlu1 %v4433_v46, %s4050_s26 }
 0xb51   :  { %1923 = vrot.lane.b32.xlu0 %v4436_v49, %s4051_s27 }
 0xb53   :  { %1847 = vrot.lane.b32.xlu1 %v4433_v46, %s4051_s27 }
 0xbb7   :  { %v4454_v10 = vpop.permute.xlu0 %1835 }
 0xbb8   :  { %1999 = vrot.lane.b32.xlu1 %v4454_v10, %s4051_s27 }
 0xbb9   :  { %v4458_v51 = vpop.permute.xlu1 %1837 }
 0xbba   :  { %2075 = vrot.lane.b32.xlu0 %v4458_v51, %s4051_s27 }
 0xbbb   :  { %v4462_v21 = vpop.permute.xlu0 %1841 }
 0xbbd   :  { %v4464_v22 = vpop.permute.xlu1 %1839 }
 0xbbe   :  { %2227 = vrot.lane.b32.xlu0 %v4462_v21, %s4051_s27  ;;  %2151 = vrot.lane.b32.xlu1 %v4464_v22, %s4051_s27 }
 0xbbf   :  { %v4470_v52 = vpop.permute.xlu0 %1845 }
 0xbc1   :  { %v4472_v55 = vpop.permute.xlu1 %1843 }
 0xbc2   :  { %2379 = vrot.lane.b32.xlu0 %v4470_v52, %s4051_s27  ;;  %2303 = vrot.lane.b32.xlu1 %v4472_v55, %s4051_s27 }
 0xbc3   :  { %v1924_v57 = vpop.permute.xlu0 %1923 }
 0xbc5   :  { %v1848_v56 = vpop.permute.xlu1 %1847 }
 0xbc6   :  { %3701 = vmatpush3.xpose.msk.msra.mxu0 %vm184_vm2, %v1848_v56 }
 0xbc7   :  { %3705 = vmatprep.subr.mxu0 %v4046_v0 }
 0xbc9   :  { %3703 = vmatmul.mubr.msk.f32.vlgmr.msra.gmra.mrb[28].mxu0 %vm184_vm2, %v4433_v46 }
 0xbca   :  { %3706 = vmatpush3.xpose.msk.msra.mxu0 %vm184_vm2, %v1924_v57  ;;  %3707 = vmatprep.mubr.msk.f32.mxu0 %vm4047_vm0, %v4046_v0 }
 0xbcb   :  { %3715 = vmatprep.subr.mxu0 %v4046_v0 }
 0xbcd   :  { %3708 = vmatmul.mubr.msk.f32.vlgmr.msra.gmra.mrb[30].mxu0 %vm184_vm2, %v4436_v49 }
 0xbce   :  { %3717 = vmatprep.mubr.msk.f32.mxu0 %vm4047_vm0, %v4046_v0 }
 0xc2a   :  { %v2000_v58 = vpop.permute.xlu1 %1999 }
 0xc2b   :  { %3711 = vmatpush3.xpose.msk.msra.mxu1 %vm184_vm2, %v2000_v58 }
 0xc2c   :  { %v2076_v59 = vpop.permute.xlu0 %2075  ;;  %3720 = vmatprep.subr.mxu1 %v4046_v0 }
 0xc2d   :  { %3716 = vmatpush3.xpose.msk.msra.mxu0 %vm184_vm2, %v2076_v59 }
 0xc2e   :  { %3713 = vmatmul.mubr.msk.f32.vlgmr.msra.gmra.mrb[24].mxu1 %vm184_vm2, %v4454_v10  ;;  %3725 = vmatprep.subr.mxu0 %v4046_v0 }
 0xc2f   :  { %3722 = vmatprep.mubr.msk.f32.mxu1 %vm4047_vm0, %v4046_v0 }
 0xc30   :  { %v2228_v60 = vpop.permute.xlu0 %2227  ;;  %3718 = vmatmul.mubr.msk.f32.vlgmr.msra.gmra.mrb[32].mxu0 %vm184_vm2, %v4458_v51  ;;  %v2152_v61 = vpop.permute.xlu1 %2151 }
 0xc31   :  { %3721 = vmatpush3.xpose.msk.msra.mxu1 %vm184_vm2, %v2152_v61  ;;  %3726 = vmatpush3.xpose.msk.msra.mxu0 %vm184_vm2, %v2228_v60 }
 0xc32   :  { %3727 = vmatprep.mubr.msk.f32.mxu0 %vm4047_vm0, %v4046_v0  ;;  %3730 = vmatprep.subr.mxu1 %v4046_v0 }
 0xc33   :  { %3735 = vmatprep.subr.mxu0 %v4046_v0 }
 0xc34   :  { %v2380_v62 = vpop.permute.xlu0 %2379  ;;  %3723 = vmatmul.mubr.msk.f32.vlgmr.msra.gmra.mrb[26].mxu1 %vm184_vm2, %v4464_v22  ;;  %3728 = vmatmul.mubr.msk.f32.vlgmr.msra.gmra.mrb[34].mxu0 %vm184_vm2, %v4462_v21  ;;  %v2304_v63 = vpop.permute.xlu1 %2303 }
 0xc35   :  { %3731 = vmatpush3.xpose.msk.msra.mxu1 %vm184_vm2, %v2304_v63  ;;  %3736 = vmatpush3.xpose.msk.msra.mxu0 %vm184_vm2, %v2380_v62 }
 0xc36   :  { %3732 = vmatprep.mubr.msk.f32.mxu1 %vm4047_vm0, %v4046_v0  ;;  %3737 = vmatprep.mubr.msk.f32.mxu0 %vm4047_vm0, %v4046_v0 }
 0xc37   :  { %3740 = vmatprep.subr.mxu1 %v4046_v0  ;;  %3745 = vmatprep.subr.mxu0 %v4046_v0 }
 0xc38   :  { %3733 = vmatmul.mubr.msk.f32.vlgmr.msra.gmra.mrb[28].mxu1 %vm184_vm2, %v4472_v55  ;;  %3738 = vmatmul.mubr.msk.f32.vlgmr.msra.gmra.mrb[36].mxu0 %vm184_vm2, %v4470_v52 }
 0xc39   :  { %3742 = vmatprep.mubr.msk.f32.mxu1 %vm4047_vm0, %v4046_v0  ;;  %3747 = vmatprep.mubr.msk.f32.mxu0 %vm4047_vm0, %v4046_v0 }
 0xc9c   :  { %v1919_v5 = vpop.f32.mrb[28].mxu0 }
 0xc9d   :  { %v3704_v6 = vpop.f32.mrb[29].mxu0  ;;  %v2455_v8 = vsel %vm184_vm2, %v1919_v5, -inf }
 0xc9e   :  { %2456 = vmax.xlane.f32.xlu1 %v2455_v8 }
 0xca0   :  { %v1995_v11 = vpop.f32.mrb[30].mxu0 }
 0xca1   :  { %v3709_v12 = vpop.f32.mrb[31].mxu0  ;;  %v2458_v13 = vsel %vm184_vm2, %v1995_v11, -inf }
 0xca2   :  { %2459 = vmax.xlane.f32.xlu0 %v2458_v13 }
 0xd01   :  { %v2071_v14 = vpop.f32.mrb[24].mxu1 }
 0xd02   :  { %v3714_v15 = vpop.f32.mrb[25].mxu1  ;;  %v2461_v16 = vsel %vm184_vm2, %v2071_v14, -inf }
 0xd03   :  { %2462 = vmax.xlane.f32.xlu0 %v2461_v16  ;;  %v2147_v3 = vpop.f32.mrb[32].mxu0 }
 0xd04   :  { %v3719_v23 = vpop.f32.mrb[33].mxu0  ;;  %v2464_v24 = vsel %vm184_vm2, %v2147_v3, -inf }
 0xd05   :  { %2465 = vmax.xlane.f32.xlu1 %v2464_v24 }
 0xd07   :  { %v2223_v26 = vpop.f32.mrb[26].mxu1  ;;  %v2299_v27 = vpop.f32.mrb[34].mxu0 }
 0xd08   :  { %v3724_v28 = vpop.f32.mrb[27].mxu1  ;;  %v3729_v29 = vpop.f32.mrb[35].mxu0  ;;  %v2467_v30 = vsel %vm184_vm2, %v2223_v26, -inf  ;;  %v2470_v32 = vsel %vm184_vm2, %v2299_v27, -inf }
 0xd09   :  { %2468 = vmax.xlane.f32.xlu0 %v2467_v30  ;;  %2471 = vmax.xlane.f32.xlu1 %v2470_v32 }
 0xd0b   :  { %v2375_v34 = vpop.f32.mrb[28].mxu1  ;;  %v2451_v35 = vpop.f32.mrb[36].mxu0 }
 0xd0c   :  { %v3734_v36 = vpop.f32.mrb[29].mxu1  ;;  %v3739_v37 = vpop.f32.mrb[37].mxu0  ;;  %v2473_v40 = vsel %vm184_vm2, %v2375_v34, -inf  ;;  %v2476_v41 = vsel %vm184_vm2, %v2451_v35, -inf }
 0xd0d   :  { %2474 = vmax.xlane.f32.xlu0 %v2473_v40  ;;  %2477 = vmax.xlane.f32.xlu1 %v2476_v41 }
 0xd1e   :  { %2619 = vrot.lane.b32.xlu1 %v4436_v49, %s4040_s22 }
 0xd22   :  { %2695 = vrot.lane.b32.xlu1 %v4454_v10, %s4040_s22 }
 0xd23   :  { %2543 = vrot.lane.b32.xlu0 %v4433_v46, %s4040_s22 }
 0xd26   :  { %2847 = vrot.lane.b32.xlu1 %v4464_v22, %s4040_s22 }
 0xd27   :  { %2771 = vrot.lane.b32.xlu0 %v4458_v51, %s4040_s22 }
 0xd2b   :  { %2923 = vrot.lane.b32.xlu0 %v4462_v21, %s4040_s22  ;;  %v2457_v42 = vpop.xlane.xlu1 %2456 }
 0xd2c   :  { %v2479_v9 = vsub.f32 %v1919_v5, %v2457_v42 }
 0xd2e   :  { %v2487_v48 = vmul.f32 1.442695, %v2479_v9 }
 0xd2f   :  { %v2460_v7 = vpop.xlane.xlu0 %2459 }
 0xd30   :  { %v2480_v47 = vsub.f32 %v1995_v11, %v2460_v7  ;;  %3905 = vpow2.f32 %v2487_v48 }
 0xd32   :  { %v2489_v49 = vmul.f32 1.442695, %v2480_v47 }
 0xd34   :  { %3907 = vpow2.f32 %v2489_v49 }
 0xd3a   :  { %v4546_v50 = vpop.eup %3905 }
 0xd3b   :  { %v2503_v10 = vsel %vm184_vm2, %v4546_v50, 0.0 }
 0xd3e   :  { %v4548_v46 = vpop.eup %3907 }
 0xd3f   :  { %v2506_v51 = vsel %vm184_vm2, %v4548_v46, 0.0 }
 0xd4a   :  { %2504 = vadd.xlane.f32.xlu0 %v2503_v10  ;;  %2507 = vadd.xlane.f32.xlu1 %v2506_v51 }
 0xd90   :  { %v2463_v21 = vpop.xlane.xlu0 %2462 }
 0xd91   :  { %v2481_v22 = vsub.f32 %v2071_v14, %v2463_v21 }
 0xd92   :  { %v2466_v56 = vpop.xlane.xlu1 %2465 }
 0xd93   :  { %v2491_v57 = vmul.f32 1.442695, %v2481_v22  ;;  %v2482_v58 = vsub.f32 %v2147_v3, %v2466_v56 }
 0xd95   :  { %3909 = vpow2.f32 %v2491_v57  ;;  %v2493_v59 = vmul.f32 1.442695, %v2482_v58 }
 0xd96   :  { %v2469_v60 = vpop.xlane.xlu0 %2468  ;;  %v2472_v61 = vpop.xlane.xlu1 %2471 }
 0xd97   :  { %3911 = vpow2.f32 %v2493_v59  ;;  %v2483_v62 = vsub.f32 %v2223_v26, %v2469_v60  ;;  %v2484_v63 = vsub.f32 %v2299_v27, %v2472_v61 }
 0xd99   :  { %v2495_v5 = vmul.f32 1.442695, %v2483_v62  ;;  %v2497_v6 = vmul.f32 1.442695, %v2484_v63 }
 0xd9a   :  { %v2475_v8 = vpop.xlane.xlu0 %2474  ;;  %v2478_v11 = vpop.xlane.xlu1 %2477 }
 0xd9b   :  { %3913 = vpow2.f32 %v2495_v5  ;;  %v2485_v12 = vsub.f32 %v2375_v34, %v2475_v8  ;;  %v2486_v13 = vsub.f32 %v2451_v35, %v2478_v11 }
 0xd9c   :  { %3915 = vpow2.f32 %v2497_v6 }
 0xd9d   :  { %v2499_v15 = vmul.f32 1.442695, %v2485_v12  ;;  %v2501_v14 = vmul.f32 1.442695, %v2486_v13 }
 0xd9e   :  { %v2544_v16 = vpop.permute.xlu0 %2543  ;;  %v2620_v23 = vpop.permute.xlu1 %2619 }
 0xd9f   :  { %v3910_v3 = vpop.eup %3909  ;;  %3917 = vpow2.f32 %v2499_v15  ;;  %3741 = vmatpush3.msra.mxu1 %v2544_v16  ;;  %3746 = vmatpush3.msra.mxu0 %v2620_v23 }
 0xda0   :  { %3919 = vpow2.f32 %v2501_v14  ;;  %v2509_v24 = vsel %vm184_vm2, %v3910_v3, 0.0  ;;  %3750 = vmatprep.subr.mxu1 %v4046_v0  ;;  %3755 = vmatprep.subr.mxu0 %v4046_v0 }
 0xda1   :  { %v3912_v26 = vpop.eup %3911  ;;  %2510 = vadd.xlane.f32.xlu0 %v2509_v24 }
 0xda2   :  { %v2512_v27 = vsel %vm184_vm2, %v3912_v26, 0.0  ;;  %v2772_v40 = vpop.permute.xlu0 %2771  ;;  %v2696_v41 = vpop.permute.xlu1 %2695 }
 0xda3   :  { %2513 = vadd.xlane.f32.xlu1 %v2512_v27 }
 0xda5   :  { %v3914_v28 = vpop.eup %3913 }
 0xda6   :  { %v3916_v29 = vpop.eup %3915  ;;  %v2515_v30 = vsel %vm184_vm2, %v3914_v28, 0.0  ;;  %v2924_v42 = vpop.permute.xlu0 %2923 }
 0xda7   :  { %2516 = vadd.xlane.f32.xlu0 %v2515_v30  ;;  %v2518_v32 = vsel %vm184_vm2, %v3916_v29, 0.0  ;;  %v2848_v7 = vpop.permute.xlu1 %2847 }
 0xda8   :  { %2519 = vadd.xlane.f32.xlu1 %v2518_v32 }
 0xda9   :  { %v4560_v34 = vpop.eup %3917 }
 0xdaa   :  { %v4562_v35 = vpop.eup %3919  ;;  %v2521_v36 = vsel %vm184_vm2, %v4560_v34, 0.0 }
 0xdab   :  { %2522 = vadd.xlane.f32.xlu0 %v2521_v36  ;;  %v2524_v37 = vsel %vm184_vm2, %v4562_v35, 0.0 }
 0xdac   :  { %2525 = vadd.xlane.f32.xlu1 %v2524_v37 }
 0xdbd   :  { %2999 = vrot.lane.b32.xlu1 %v4472_v55, %s4040_s22 }
 0xdc1   :  { %3075 = vrot.lane.b32.xlu0 %v4470_v52, %s4040_s22 }
 0xdd7   :  { %v2505_v9 = vpop.xlane.xlu0 %2504  ;;  %v2508_v47 = vpop.xlane.xlu1 %2507 }
 0xdd8   :  { %3921 = vrcp.f32 %v2505_v9 }
 0xdd9   :  { %3923 = vrcp.f32 %v2508_v47 }
 0xde2   :  { %v3922_v48 = vpop.eup %3921 }
 0xde3   :  { %v3924_v49 = vpop.eup %3923  ;;  %v2535_v10 = vmul.f32 %v3922_v48, %v4546_v50 }
 0xde4   :  { %v2536_v51 = vmul.f32 %v3924_v49, %v4548_v46 }
 0xde5   :  { %3743 = vmatmul.mubr.msk.f32.vlgmr.msra.gmra.mrb[30].mxu1 %vm184_vm2, %v2535_v10 }
 0xde6   :  { %3748 = vmatmul.mubr.msk.f32.vlgmr.msra.gmra.mrb[38].mxu0 %vm184_vm2, %v2536_v51  ;;  %3751 = vmatpush3.msra.mxu1 %v2696_v41 }
 0xde7   :  { %3756 = vmatpush3.msra.mxu0 %v2772_v40  ;;  %3752 = vmatprep.mubr.msk.f32.mxu1 %vm4047_vm0, %v4046_v0 }
 0xde8   :  { %3760 = vmatprep.subr.mxu1 %v4046_v0  ;;  %3757 = vmatprep.mubr.msk.f32.mxu0 %vm4047_vm0, %v4046_v0 }
 0xde9   :  { %3765 = vmatprep.subr.mxu0 %v4046_v0 }
 0xe2e   :  { %v2511_v52 = vpop.xlane.xlu0 %2510 }
 0xe2f   :  { %3925 = vrcp.f32 %v2511_v52 }
 0xe30   :  { %v2514_v55 = vpop.xlane.xlu1 %2513 }
 0xe31   :  { %3927 = vrcp.f32 %v2514_v55 }
 0xe34   :  { %v2517_v50 = vpop.xlane.xlu0 %2516 }
 0xe35   :  { %3929 = vrcp.f32 %v2517_v50  ;;  %v2520_v46 = vpop.xlane.xlu1 %2519 }
 0xe36   :  { %3931 = vrcp.f32 %v2520_v46 }
 0xe38   :  { %v2523_v21 = vpop.xlane.xlu0 %2522 }
 0xe39   :  { %v3926_v22 = vpop.eup %3925  ;;  %3933 = vrcp.f32 %v2523_v21  ;;  %v2526_v56 = vpop.xlane.xlu1 %2525 }
 0xe3a   :  { %v2537_v57 = vmul.f32 %v3926_v22, %v3910_v3  ;;  %3935 = vrcp.f32 %v2526_v56 }
 0xe3b   :  { %v3928_v58 = vpop.eup %3927 }
 0xe3c   :  { %v2538_v59 = vmul.f32 %v3928_v58, %v3912_v26  ;;  %3753 = vmatmul.mubr.msk.f32.vlgmr.msra.gmra.mrb[32].mxu1 %vm184_vm2, %v2537_v57  ;;  %v3076_v8 = vpop.permute.xlu0 %3075 }
 0xe3d   :  { %3761 = vmatpush3.msra.mxu1 %v2848_v7  ;;  %3762 = vmatprep.mubr.msk.f32.mxu1 %vm4047_vm0, %v4046_v0  ;;  %v3000_v5 = vpop.permute.xlu1 %2999 }
 0xe3e   :  { %3758 = vmatmul.mubr.msk.f32.vlgmr.msra.gmra.mrb[40].mxu0 %vm184_vm2, %v2538_v59  ;;  %3770 = vmatprep.subr.mxu1 %v4046_v0 }
 0xe3f   :  { %v3930_v60 = vpop.eup %3929  ;;  %3766 = vmatpush3.msra.mxu0 %v2924_v42  ;;  %3767 = vmatprep.mubr.msk.f32.mxu0 %vm4047_vm0, %v4046_v0 }
 0xe40   :  { %v3932_v61 = vpop.eup %3931  ;;  %v2539_v62 = vmul.f32 %v3930_v60, %v3914_v28  ;;  %3775 = vmatprep.subr.mxu0 %v4046_v0 }
 0xe41   :  { %v2540_v63 = vmul.f32 %v3932_v61, %v3916_v29 }
 0xe42   :  { %3763 = vmatmul.mubr.msk.f32.vlgmr.msra.gmra.mrb[34].mxu1 %vm184_vm2, %v2539_v62 }
 0xe43   :  { %v3934_v6 = vpop.eup %3933  ;;  %3768 = vmatmul.mubr.msk.f32.vlgmr.msra.gmra.mrb[42].mxu0 %vm184_vm2, %v2540_v63  ;;  %3771 = vmatpush3.msra.mxu1 %v3000_v5 }
 0xe44   :  { %v3936_v11 = vpop.eup %3935  ;;  %v2541_v12 = vmul.f32 %v3934_v6, %v4560_v34  ;;  %3776 = vmatpush3.msra.mxu0 %v3076_v8  ;;  %3772 = vmatprep.mubr.msk.f32.mxu1 %vm4047_vm0, %v4046_v0 }
 0xe45   :  { %v2542_v13 = vmul.f32 %v3936_v11, %v4562_v35  ;;  %3777 = vmatprep.mubr.msk.f32.mxu0 %vm4047_vm0, %v4046_v0  ;;  %3780 = vmatprep.subr.bf16.mxu1 %v4046_v0 }
 0xe46   :  { %3773 = vmatmul.mubr.msk.f32.vlgmr.msra.gmra.mrb[36].mxu1 %vm184_vm2, %v2541_v12  ;;  %3788 = vmatprep.subr.bf16.mxu0 %v4046_v0 }
 0xe47   :  { %3778 = vmatmul.mubr.msk.f32.vlgmr.msra.gmra.mrb[44].mxu0 %vm184_vm2, %v2542_v13  ;;  %3781 = vmatpush3.bf16.msra.mxu1 %v4317_v20 }
 0xe48   :  { %3782 = vmatprep.subr.bf16.mxu1 %v4046_v0  ;;  %3784 = vmatprep.mubr.msk.bf16.mxu1 %vm4047_vm0, %v4046_v0 }
 0xe49   :  { %3789 = vmatpush3.bf16.msra.mxu0 %v4349_v17  ;;  %3792 = vmatprep.mubr.msk.bf16.mxu0 %vm4047_vm0, %v4046_v0 }
 0xe4a   :  { %3790 = vmatprep.subr.bf16.mxu0 %v4046_v0 }
 0xe4b   :  { %3783 = vmatpush3.bf16.msra.mxu1 %v4321_v25 }
 0xe4c   :  { %3796 = vmatprep.subr.bf16.mxu1 %v4046_v0 }
 0xe4d   :  { %3791 = vmatpush3.bf16.msra.mxu0 %v4352_v4 }
 0xeb8   :  { %v2615_v15 = vpop.f32.mrb[30].mxu1 }
 0xeb9   :  { %v2691_v20 = vpop.f32.mrb[38].mxu0  ;;  %v3744_v14 = vpop.f32.mrb[31].mxu1 }
 0xeba   :  { %v3749_v16 = vpop.f32.mrb[39].mxu0 }
 0xf0f   :  { %v2767_v23 = vpop.f32.mrb[32].mxu1 }
 0xf10   :  { %v3754_v3 = vpop.f32.mrb[33].mxu1 }
 0xf11   :  { %v2843_v24 = vpop.f32.mrb[40].mxu0 }
 0xf12   :  { %v3840_v26 = vpack.i.bf16 %v2843_v24, %v2767_v23  ;;  %v3759_v17 = vpop.f32.mrb[41].mxu0 }
 0xf14   :  { %3841 = vrot.lane.b32.xlu1 %v3840_v26, %s4044_s9 }
 0xf15   :  { %v2919_v27 = vpop.f32.mrb[34].mxu1 }
 0xf16   :  { %v2995_v28 = vpop.f32.mrb[42].mxu0  ;;  %v3764_v29 = vpop.f32.mrb[35].mxu1 }
 0xf17   :  { %v3845_v30 = vpack.i.bf16 %v2995_v28, %v2919_v27  ;;  %v3769_v25 = vpop.f32.mrb[43].mxu0 }
 0xf19   :  { %3846 = vrot.lane.b32.xlu0 %v3845_v30, %s4052_s28  ;;  %v3071_v32 = vpop.f32.mrb[36].mxu1 }
 0xf1a   :  { %v3147_v4 = vpop.f32.mrb[44].mxu0  ;;  %v3774_v34 = vpop.f32.mrb[37].mxu1 }
 0xf1b   :  { %v3850_v35 = vpack.i.bf16 %v3147_v4, %v3071_v32  ;;  %v3779_v36 = vpop.f32.mrb[45].mxu0 }
 0xf1d   :  { %3851 = vrot.lane.b32.xlu1 %v3850_v35, %s4053_s29 }
 0xf86   :  { %v3842_v37 = vpop.permute.xlu1 %3841 }
 0xf87   :  { %v3844_v41 = vunpack.i.h.bf16 %v3842_v37  ;;  %v3843_v42 = vunpack.i.l.bf16 %v3842_v37 }
 0xf89   :  { %v3176_v48 = vsel %vm184_vm2, %v2691_v20, %v3844_v41  ;;  %v3175_v49 = vsel %vm184_vm2, %v2615_v15, %v3843_v42 }
 0xf8b   :  { %v3847_v40 = vpop.permute.xlu0 %3846 }
 0xf8c   :  { %v3849_v7 = vunpack.i.h.bf16 %v3847_v40  ;;  %v3848_v9 = vunpack.i.l.bf16 %v3847_v40 }
 0xf8e   :  { %v3178_v52 = vsel %vm1513_vm3, %v3176_v48, %v3849_v7  ;;  %v3177_v55 = vsel %vm1513_vm3, %v3175_v49, %v3848_v9 }
 0xf8f   :  { %v3852_v47 = vpop.permute.xlu1 %3851 }
 0xf90   :  { %v3854_v10 = vunpack.i.h.bf16 %v3852_v47  ;;  %v3853_v51 = vunpack.i.l.bf16 %v3852_v47 }
 0xf92   :  { %v3180_v50 = vsel %vm1516_vm4, %v3178_v52, %v3854_v10  ;;  %v3179_v46 = vsel %vm1516_vm4, %v3177_v55, %v3853_v51 }
 0xf93   :  { %v3181_v21 = vpack.c.bf16 %v3180_v50, %v3179_v46 }
 0xf95   :  { %3785 = vmatmul.mubr.msk.bf16.vlgmr.msra.gmra.mrb[40].mxu1 %vm123_vm1, %v3181_v21 }
 0xf96   :  { %3797 = vmatpush3.bf16.msra.mxu1 %v4357_v18  ;;  %3804 = vmatprep.mubr.msk.bf16.mxu1 %vm4047_vm0, %v4046_v0 }
 0xf97   :  { %3798 = vmatprep.subr.bf16.mxu1 %v4046_v0 }
 0xf9a   :  { %3799 = vmatpush3.bf16.msra.mxu1 %v4360_v19 }
 0xf9b   :  { %3800 = vmatprep.subr.bf16.mxu1 %v4046_v0 }
 0xf9e   :  { %3801 = vmatpush3.bf16.msra.mxu1 %v4384_v43 }
 0xf9f   :  { %3802 = vmatprep.subr.bf16.mxu1 %v4046_v0 }
 0xfa2   :  { %3803 = vmatpush3.bf16.msra.mxu1 %v4388_v44 }
0x1068   :  { %v3219_v22 = vpop.f32.mrb[40].mxu1 }
0x1069   :  { %v3220_v56 = vadd.f32 %v3219_v22, %v4339_v53  ;;  %v3786_v57 = vpop.f32.mrb[41].mxu1 }
0x106a   :  { %v3222_v18 = vpop.f32.mrb[42].mxu1 }
0x106b   :  { %v3223_v58 = vadd.f32 %v3222_v18, %v4339_v53  ;;  %v3787_v59 = vpop.f32.mrb[43].mxu1  ;;  %v3226_v60 = vadd.f32 %v3220_v56, %v4422_v1 }
0x106d   :  { %v3228_v19 = vsel %vm123_vm1, %v3226_v60, 0.0  ;;  %v3227_v61 = vadd.f32 %v3223_v58, %v4425_v2  ;;  %v1771_v58 = vrot.slane %v4422_v1, 4 }
0x106e   :  { %3229 = vadd.xlane.f32.xlu0 %v3228_v19 }
0x106f   :  { %v3231_v43 = vsel %vm123_vm1, %v3227_v61, 0.0 }
0x1070   :  { %3232 = vadd.xlane.f32.xlu1 %v3231_v43 }
0x10fb   :  { %v3230_v0 = vpop.xlane.xlu0 %3229 }
0x10fc   :  { %v3234_v44 = vmul.f32 0.03125, %v3230_v0 }
0x10fd   :  { %v3233_v62 = vpop.xlane.xlu1 %3232 }
0x10fe   :  { %v3236_v63 = vsub.f32 %v3226_v60, %v3234_v44  ;;  %v3235_v5 = vmul.f32 0.03125, %v3233_v62 }
0x1100   :  { %v3237_v6 = vsub.f32 %v3227_v61, %v3235_v5  ;;  %v3238_v8 = vmul.f32 %v3236_v63, %v3236_v63 }
0x1102   :  { %v3240_v53 = vsel %vm123_vm1, %v3238_v8, 0.0  ;;  %v3239_v11 = vmul.f32 %v3237_v6, %v3237_v6 }
0x1103   :  { %3241 = vadd.xlane.f32.xlu0 %v3240_v53 }
0x1104   :  { %v3243_v12 = vsel %vm123_vm1, %v3239_v11, 0.0 }
0x1107   :  { %3244 = vadd.xlane.f32.xlu0 %v3243_v12 }
0x1190   :  { %v3242_v13 = vpop.xlane.xlu0 %3241 }
0x1191   :  { %v3246_v15 = vmul.f32 0.03125, %v3242_v13 }
0x1193   :  { %v3248_v20 = vadd.f32 1e-05, %v3246_v15  ;;  %v1779_v15 = vrot.slane %v4425_v2, 4 }
0x1194   :  { %v3245_v14 = vpop.xlane.xlu0 %3244 }
0x1195   :  { %3937 = vrsqrt.f32 %v3248_v20  ;;  %v3247_v16 = vmul.f32 0.03125, %v3245_v14 }
0x1197   :  { %v3249_v23 = vadd.f32 1e-05, %v3247_v16 }
0x1199   :  { %3939 = vrsqrt.f32 %v3249_v23 }
0x119f   :  { %v3938_v3 = vpop.eup %3937 }
0x11a0   :  { %v3252_v24 = vmul.f32 %v3938_v3, %v3236_v63 }
0x11a2   :  { %v3254_v17 = vmul.f32 %v3252_v24, %v4367_v31 }
0x11a3   :  { %v3940_v26 = vpop.eup %3939 }
0x11a4   :  { %v3253_v27 = vmul.f32 %v3940_v26, %v3237_v6  ;;  %v3256_v29 = vadd.f32 %v3254_v17, %v4372_v38 }
0x11a6   :  { %v3255_v28 = vmul.f32 %v3253_v27, %v4367_v31 }
0x11a8   :  { %v3257_v30 = vadd.f32 %v3255_v28, %v4372_v38 }
0x11aa   :  { %v3258_v25 = vpack.c.bf16 %v3257_v30, %v3256_v29 }
0x11ac   :  { %3793 = vmatmul.mubr.msk.bf16.vlgmr.msra.gmra.mrb[48].mxu0 %vm123_vm1, %v3258_v25 }
0x127f   :  { %v3296_v32 = vpop.f32.mrb[48].mxu0 }
0x1280   :  { %v3297_v4 = vadd.f32 %v3296_v32, %v4394_v45  ;;  %v3794_v34 = vpop.f32.mrb[49].mxu0 }
0x1281   :  { %v3299_v35 = vpop.f32.mrb[50].mxu0 }
0x1282   :  { %v3300_v36 = vadd.f32 %v3299_v35, %v4394_v45  ;;  %v3795_v37 = vpop.f32.mrb[51].mxu0  ;;  %v3303_v40 = vmax.f32 %v3297_v4, 0.0 }
0x1284   :  { %v3304_v41 = vmax.f32 %v3300_v36, 0.0 }
0x1286   :  { %v3305_v42 = vpack.c.bf16 %v3304_v41, %v3303_v40 }
0x1288   :  { %3805 = vmatmul.mubr.msk.bf16.vlgmr.msra.gmra.mrb[44].mxu1 %vm1693_vm5, %v3305_v42 }
0x135b   :  { %v3343_v31 = vpop.f32.mrb[44].mxu1 }
0x135c   :  { %v3344_v7 = vadd.f32 %v3343_v31, %v4403_v54  ;;  %v3806_v38 = vpop.f32.mrb[45].mxu1 }
0x135d   :  { %v3346_v9 = vpop.f32.mrb[46].mxu1 }
0x135e   :  { %v3347_v47 = vadd.f32 %v3346_v9, %v4403_v54  ;;  %v3807_v48 = vpop.f32.mrb[47].mxu1  ;;  %v3350_v49 = vadd.f32 %v3344_v7, %v3256_v29 }
0x1360   :  { %v3352_v10 = vsel %vm123_vm1, %v3350_v49, 0.0  ;;  %v3351_v51 = vadd.f32 %v3347_v47, %v3257_v30 }
0x1361   :  { %3353 = vadd.xlane.f32.xlu1 %v3352_v10 }
0x1362   :  { %v3355_v45 = vsel %vm123_vm1, %v3351_v51, 0.0 }
0x1363   :  { %3356 = vadd.xlane.f32.xlu0 %v3355_v45 }
0x13ee   :  { %v3354_v52 = vpop.xlane.xlu1 %3353 }
0x13ef   :  { %v3358_v55 = vmul.f32 0.03125, %v3354_v52 }
0x13f0   :  { %v3357_v50 = vpop.xlane.xlu0 %3356 }
0x13f1   :  { %v3360_v46 = vsub.f32 %v3350_v49, %v3358_v55  ;;  %v3359_v21 = vmul.f32 0.03125, %v3357_v50 }
0x13f3   :  { %v3361_v22 = vsub.f32 %v3351_v51, %v3359_v21  ;;  %v3362_v56 = vmul.f32 %v3360_v46, %v3360_v46 }
0x13f5   :  { %v3364_v57 = vsel %vm123_vm1, %v3362_v56, 0.0  ;;  %v3363_v18 = vmul.f32 %v3361_v22, %v3361_v22 }
0x13f6   :  { %3365 = vadd.xlane.f32.xlu1 %v3364_v57 }
0x13f7   :  { %v3367_v54 = vsel %vm123_vm1, %v3363_v18, 0.0 }
0x13f8   :  { %3368 = vadd.xlane.f32.xlu0 %v3367_v54 }
0x1407   :  { %1772 = vrot.lane.b32.xlu1 %v1771_v58, %s4054_s30 }
0x140b   :  { %1776 = vrot.lane.b32.xlu1 %v4425_v2, %s4040_s22 }
0x1483   :  { %v3366_v59 = vpop.xlane.xlu1 %3365 }
0x1484   :  { %v3370_v60 = vmul.f32 0.03125, %v3366_v59 }
0x1485   :  { %v3369_v19 = vpop.xlane.xlu0 %3368 }
0x1486   :  { %v3372_v61 = vadd.f32 1e-05, %v3370_v60  ;;  %v3371_v43 = vmul.f32 0.03125, %v3369_v19 }
0x1487   :  { %v1773_v20 = vpop.permute.xlu1 %1772 }
0x1488   :  { %3941 = vrsqrt.f32 %v3372_v61  ;;  %v3373_v0 = vadd.f32 1e-05, %v3371_v43 }
0x148a   :  { %3943 = vrsqrt.f32 %v3373_v0 }
0x148b   :  { %v1777_v14 = vpop.permute.xlu1 %1776 }
0x1492   :  { %v3942_v44 = vpop.eup %3941 }
0x1493   :  { %v3376_v62 = vmul.f32 %v3942_v44, %v3360_v46 }
0x1494   :  { %v3944_v63 = vpop.eup %3943 }
0x1495   :  { %v3378_v5 = vmul.f32 %v3376_v62, %v4413_v33  ;;  %v3377_v6 = vmul.f32 %v3944_v63, %v3361_v22 }
0x1497   :  { %v3380_v8 = vadd.f32 %v3378_v5, %v4417_v39  ;;  %v3379_v53 = vmul.f32 %v3377_v6, %v4413_v33  ;;  %v1783_v33 = vsel %vm123_vm1, %v4422_v1, %v1773_v20 }
0x1499   :  { %v3383_v11 = vrot.slane %v3380_v8, 4  ;;  %v3381_v12 = vadd.f32 %v3379_v53, %v4417_v39  ;;  %v1784_v39 = vsel %vm1693_vm5, %v1783_v33, %v1777_v14 }
0x149b   :  { %3384 = vrot.lane.b32.xlu0 %v3383_v11, %s4054_s30  ;;  %3388 = vrot.lane.b32.xlu1 %v3381_v12, %s4040_s22  ;;  %v3391_v13 = vrot.slane %v3381_v12, 4 }
0x149f   :  { %1780 = vrot.lane.b32.xlu0 %v1779_v15, %s4051_s27  ;;  %3392 = vrot.lane.b32.xlu1 %v3391_v13, %s4051_s27 }
0x150d   :  { %v3389_v16 = vpop.permute.xlu1 %3388  ;;  %v3385_v23 = vpop.permute.xlu0 %3384 }
0x150e   :  { %v3395_v3 = vsel %vm123_vm1, %v3380_v8, %v3385_v23 }
0x150f   :  { %v3396_v2 = vsel %vm1693_vm5, %v3395_v3, %v3389_v16 }
0x1511   :  { %v3393_v24 = vpop.permute.xlu1 %3392  ;;  %v1781_v26 = vpop.permute.xlu0 %1780 }
0x1512   :  { %v3397_v17 = vsel %vm1785_vm6, %v3396_v2, %v3393_v24  ;;  %v1786_v27 = vsel %vm1785_vm6, %v1784_v39, %v1781_v26 }
0x1513   :  { %3399 = vst [vmem:[#allocation8 + $0x4] sm:$0xf] %v3397_v17  ;;  %1787 = vst [vmem:[#allocation8] sm:$0xf] %v1786_v27 }
0x1514   :  { %4022 = shalt.err (!%p4019_p0)
}
0x1515   :  { %s4023_s1 = scalar_lea.hbm %s4688_s3, 128 }
0x1516   :  { %p4024_p1 = scmp.ne.s32.totalorder %s4688_s3, %s4023_s1  ;;  %p4027_p2 = scmp.lt.u32.totalorder %s4023_s1, %s4688_s3 }
0x1518   :  { %p4029_p3 = pnand %p4027_p2, %p4024_p1 }
0x151a   :  { %4032 = shalt.err (!%p4029_p3)
}
0x151b   :  { %3411 = dma.vmem_to_hbm [thread:$0]  %s3406_s5, 128, %s4688_s3, [#allocation4], %s4040_s22, %s4040_s22, %s4041_s23  }
0x151c   :  { %4037 = dma.done.wait [#allocation4], 128  }
0x151d   :  { %4038 = vsyncadd [#allocation4], 4294967168 }
0x151e   :  { %3415 = vsyncpa [#allocation3], 1 }
0x151f   :  { %3416 = vsyncpa [#allocation6], 1 }
0x1520   :  { %3417 = vsyncpa [#allocation4], 1 }

</bundles_post_ra>
